<compile_context>
chip_gen: v5e
topology: v5e:2x2
jax: 0.10.0
libtpu: 0.0.40
codegen_flags: <defaults>
</compile_context>

<pallas_src>
import functools

import jax
import jax.numpy as jnp
from jax.experimental import pallas as pl
from jax.experimental.pallas import tpu as pltpu


# ----------------------------------------------------------------------------------
# Generation-aware sizing helpers
# ----------------------------------------------------------------------------------

def _vmem_capacity_bytes():
    """Per-core VMEM capacity; conservative fallback (v7x) if the query fails."""
    try:
        info = pltpu.get_tpu_info()
        for name in ("vmem_capacity_bytes", "vmem_bytes", "vmem_size_bytes"):
            v = getattr(info, name, None)
            if v:
                return int(v)
    except Exception:
        pass
    return 64 * 1024 * 1024


_TL_CANDIDATES = (1024, 512, 384, 256, 192, 128, 96, 64, 48, 32, 16)


def _pick_block_l(L, S, C, extra_out_bytes_per_row, vmem_limit, block_l=None):
    """Largest L-tile dividing L whose estimated per-step VMEM footprint fits."""
    if block_l is not None:
        assert L % block_l == 0, "block_l must divide L"
        return block_l
    divisors = [c for c in _TL_CANDIDATES if c <= L and L % c == 0]
    if not divisors:
        return L
    # resident f1t (2 bufs, bf16) + column stats (3 arrays x 2 bufs, f32)
    fixed = 2 * (C * S * 2) + 6 * (S * 4)
    # f0 (2 bufs bf16) + ~5 live f32/i32 [TL,S] temporaries + double-buffered big outputs
    per_row = 2 * (C * 2) + 5 * 4 * S + extra_out_bytes_per_row
    budget = max(vmem_limit - (8 << 20), vmem_limit // 2)
    for cand in divisors:                      # descending
        if fixed + cand * per_row <= budget:
            return cand
    return divisors[-1]


# ----------------------------------------------------------------------------------
# Pass 1: row softmax stats + online column stats + column argmax row index
# ----------------------------------------------------------------------------------

def _stats_kernel(f0_ref, f1t_ref,
                  rmax_ref, rsum_ref, cmax_ref, csum_ref, carg_ref,
                  amax_scr, *, alpha):
    """f0: (1,TL,C) bf16; f1t: (1,C,S) bf16 (resident across L tiles).

    rmax/rsum : (1,TL,1) f32  per-row sim max / exp-sum
    cmax/csum : (1,1,S)  f32  per-column sim max / exp-sum (accumulated over L tiles)
    carg      : (1,1,S)  i32  global row index of the per-column argmax of
                              a = 2*sim - rmax - log(rsum)  (== column argmax of conf)
    amax_scr  : (1,S)    f32  running per-column max of `a` (VMEM scratch)
    """
    li = pl.program_id(1)
    TL = f0_ref.shape[1]
    S = cmax_ref.shape[2]

    sim = jax.lax.dot_general(
        f0_ref[0], f1t_ref[0], (((1,), (0,)), ((), ())),
        preferred_element_type=jnp.float32) * alpha              # [TL, S] f32

    # per-row softmax stats (full S resident in this tile)
    rmax = jnp.max(sim, axis=1, keepdims=True)                   # [TL, 1]
    rsum = jnp.sum(jnp.exp(sim - rmax), axis=1, keepdims=True)   # [TL, 1]
    rmax_ref[0] = rmax
    rsum_ref[0] = rsum

    # row-normalized log score; its per-column argmax row is the column MNN winner.
    a = 2.0 * sim - (rmax + jnp.log(rsum))                       # [TL, S]
    tile_amax = jnp.max(a, axis=0, keepdims=True)                # [1, S]
    rid = jax.lax.broadcasted_iota(jnp.int32, (TL, S), 0)
    tile_arg = jnp.min(jnp.where(a == tile_amax, rid, TL),
                       axis=0, keepdims=True) + li * TL          # [1, S] global row id

    tile_cmax = jnp.max(sim, axis=0, keepdims=True)              # [1, S]

    @pl.when(li == 0)
    def _init():
        cmax_ref[0] = jnp.full((1, S), -jnp.inf, jnp.float32)
        csum_ref[0] = jnp.zeros((1, S), jnp.float32)
        carg_ref[0] = jnp.zeros((1, S), jnp.int32)
        amax_scr[...] = jnp.full((1, S), -jnp.inf, jnp.float32)

    # online (flash-style) column softmax accumulation across L tiles.
    # NOTE: the second full-tile exp is kept on purpose -- its shift (new_m) is
    # per-column while rmax is per-row; an outer-product factoring overflows f32.
    old_m = cmax_ref[0]
    new_m = jnp.maximum(old_m, tile_cmax)
    csum_ref[0] = (csum_ref[0] * jnp.exp(old_m - new_m)
                   + jnp.sum(jnp.exp(sim - new_m), axis=0, keepdims=True))
    cmax_ref[0] = new_m

    old_amax = amax_scr[...]
    carg_ref[0] = jnp.where(tile_amax > old_amax, tile_arg, carg_ref[0])
    amax_scr[...] = jnp.maximum(old_amax, tile_amax)


# ----------------------------------------------------------------------------------
# Pass 2: conf matrix + threshold / border / mutual-NN masking + per-row match info
# ----------------------------------------------------------------------------------

def _match_kernel(f0_ref, f1t_ref, rmax_ref, rsum_ref, cmax_ref, csum_ref, carg_ref,
                  conf_ref, maskv_ref, jids_ref, mconf_ref, *rest,
                  alpha, thr, border_rm, h0c, w0c, h1c, w1c, with_sim):
    sim_ref = rest[0] if with_sim else None
    li = pl.program_id(1)
    TL = conf_ref.shape[1]
    S = conf_ref.shape[2]

    # same bf16 operands / block shape as pass 1 -> identical sim tile
    sim = jax.lax.dot_general(
        f0_ref[0], f1t_ref[0], (((1,), (0,)), ((), ())),
        preferred_element_type=jnp.float32) * alpha              # [TL, S] f32
    if with_sim:
        sim_ref[0] = sim.astype(sim_ref.dtype)

    rmax = rmax_ref[0]            # [TL, 1]
    rsum = rsum_ref[0]            # [TL, 1]
    cmax = cmax_ref[0]            # [1, S]
    csum = csum_ref[0]            # [1, S]
    carg = carg_ref[0]            # [1, S] int32

    # dual softmax with a single fused exp:
    #   softmax_L(sim) * softmax_S(sim) = exp(2*sim - rmax - cmax) / (rsum * csum)
    # EXACT reciprocals of the tiny [TL,1] / [1,S] denominators (cheap) so the
    # persisted conf / mconf are not perturbed by approx recip.
    conf = jnp.exp(2.0 * sim - rmax - cmax) * ((1.0 / rsum) * (1.0 / csum))  # [TL, S]
    conf_ref[0] = conf.astype(conf_ref.dtype)

    # threshold
    mask = conf > thr

    # row indices (global) -- used for border mask and column-side MNN
    rid_g = li * TL + jax.lax.broadcasted_iota(jnp.int32, (TL, 1), 0)        # [TL, 1]

    # border removal -- separable, O(TL + S) integer work
    if border_rm > 0:
        b = border_rm
        h0 = rid_g // w0c
        w0 = rid_g % w0c
        row_in = (h0 >= b) & (h0 < h0c - b) & (w0 >= b) & (w0 < w0c - b)     # [TL, 1]
        cid = jax.lax.broadcasted_iota(jnp.int32, (1, S), 1)
        h1 = cid // w1c
        w1 = cid % w1c
        col_in = (h1 >= b) & (h1 < h1c - b) & (w1 >= b) & (w1 < w1c - b)     # [1, S]
        mask = mask & row_in & col_in

    # mutual nearest neighbour
    rowcmax = jnp.max(conf, axis=1, keepdims=True)               # [TL, 1]
    mask = mask & (conf == rowcmax)                              # row side (in-kernel exact)
    mask = mask & (rid_g == carg)                                # column side (index compare)

    # mask_v / all_j_ids / mconf  (mconf == conf[i, j] == row max for matched rows)
    any_row = jnp.any(mask, axis=1, keepdims=True)               # [TL, 1]
    jj = jax.lax.broadcasted_iota(jnp.int32, (TL, S), 1)
    first_j = jnp.min(jnp.where(mask, jj, S), axis=1, keepdims=True)
    maskv_ref[0] = any_row.astype(jnp.int32)
    jids_ref[0] = jnp.where(any_row, first_j, 0).astype(jnp.int32)
    mconf_ref[0] = jnp.where(any_row, rowcmax, 0.0)


# ----------------------------------------------------------------------------------
# Wrapper
# ----------------------------------------------------------------------------------

def _make_specs(TL, Cp, S):
    f0_spec = pl.BlockSpec((1, TL, Cp), lambda n, li: (n, li, 0))
    f1t_spec = pl.BlockSpec((1, Cp, S), lambda n, li: (n, 0, 0))
    row_spec = pl.BlockSpec((1, TL, 1), lambda n, li: (n, li, 0))
    col_spec = pl.BlockSpec((1, 1, S), lambda n, li: (n, 0, 0))
    big_spec = pl.BlockSpec((1, TL, S), lambda n, li: (n, li, 0))
    return f0_spec, f1t_spec, row_spec, col_spec, big_spec


def coarse_matching_forward(feat_c0, feat_c1, data, *,
                            thr=0.2, border_rm=2, temperature=0.1,
                            return_sim=False, block_l=None,
                            conf_dtype=jnp.float32):
    """JAX/Pallas equivalent of CoarseMatching.forward (dual_softmax, eval mode)."""
    N, L, C = feat_c0.shape
    S = feat_c1.shape[1]
    h0c, w0c = data['hw0_c']
    h1c, w1c = data['hw1_c']
    assert L == h0c * w0c and S == h1c * w1c
    # TODO(synk): padded-mask branch (mask_c0/mask_c1 + mask_border_with_padding) not implemented.

    # fold both 1/sqrt(C) scalings and 1/temperature into one post-matmul scalar
    alpha = 1.0 / (float(C) * float(temperature))

    # bf16 operands for MXU throughput; zero-pad C to a multiple of 128 (dot unchanged)
    Cp = ((C + 127) // 128) * 128
    f0 = feat_c0.astype(jnp.bfloat16)
    f1t = jnp.swapaxes(feat_c1, 1, 2).astype(jnp.bfloat16)
    if Cp != C:
        f0 = jnp.pad(f0, ((0, 0), (0, 0), (0, Cp - C)))
        f1t = jnp.pad(f1t, ((0, 0), (0, Cp - C), (0, 0)))

    # generation-aware VMEM budget / tile sizes
    cap = _vmem_capacity_bytes()
    vmem_limit = int(cap * 3 // 4)
    conf_bytes = jnp.dtype(conf_dtype).itemsize
    TL1 = _pick_block_l(L, S, Cp, 0, vmem_limit, block_l)
    TL2 = _pick_block_l(L, S, Cp,
                        2 * conf_bytes * S + (2 * 4 * S if return_sim else 0),
                        vmem_limit, block_l)

    # ---------------- pass 1: row stats + accumulated column stats ----------------
    f0_s1, f1t_s1, row_s1, col_s1, _ = _make_specs(TL1, Cp, S)
    rmax, rsum, cmax, csum, carg = pl.pallas_call(
        functools.partial(_stats_kernel, alpha=alpha),
        out_shape=(
            jax.ShapeDtypeStruct((N, L, 1), jnp.float32),   # row max of sim
            jax.ShapeDtypeStruct((N, L, 1), jnp.float32),   # row exp-sum
            jax.ShapeDtypeStruct((N, 1, S), jnp.float32),   # col max of sim
            jax.ShapeDtypeStruct((N, 1, S), jnp.float32),   # col exp-sum
            jax.ShapeDtypeStruct((N, 1, S), jnp.int32),     # col argmax row index
        ),
        grid_spec=pltpu.PrefetchScalarGridSpec(
            num_scalar_prefetch=0, grid=(N, L // TL1),
            in_specs=[f0_s1, f1t_s1],
            out_specs=[row_s1, row_s1, col_s1, col_s1, col_s1],
            scratch_shapes=[pltpu.VMEM((1, S), jnp.float32)]),
        compiler_params=pltpu.CompilerParams(
            dimension_semantics=("parallel", "arbitrary"),
            vmem_limit_bytes=vmem_limit),
    )(f0, f1t)
    # TODO(synk): for N==1 on 2-TC chips (v7x) pass 1 runs on a single core; a leading
    # parallel L-range split with per-core partial column accumulators would recover it.

    # ---------------- pass 2: conf + masking + per-row match info -----------------
    f0_s2, f1t_s2, row_s2, col_s2, big_s2 = _make_specs(TL2, Cp, S)
    out_shapes = [
        jax.ShapeDtypeStruct((N, L, S), conf_dtype),        # conf_matrix
        jax.ShapeDtypeStruct((N, L, 1), jnp.int32),         # mask_v (0/1)
        jax.ShapeDtypeStruct((N, L, 1), jnp.int32),         # all_j_ids
        jax.ShapeDtypeStruct((N, L, 1), jnp.float32),       # mconf per (b, i)
    ]
    out_specs = [big_s2, row_s2, row_s2, row_s2]
    if return_sim:
        out_shapes.append(jax.ShapeDtypeStruct((N, L, S), jnp.float32))
        out_specs.append(big_s2)

    outs = pl.pallas_call(
        functools.partial(_match_kernel, alpha=alpha, thr=float(thr),
                          border_rm=int(border_rm), h0c=h0c, w0c=w0c,
                          h1c=h1c, w1c=w1c, with_sim=return_sim),
        out_shape=tuple(out_shapes),
        grid_spec=pltpu.PrefetchScalarGridSpec(
            num_scalar_prefetch=0, grid=(N, L // TL2),
            in_specs=[f0_s2, f1t_s2, row_s2, row_s2, col_s2, col_s2, col_s2],
            out_specs=out_specs),
        compiler_params=pltpu.CompilerParams(
            dimension_semantics=("parallel", "parallel"),
            vmem_limit_bytes=vmem_limit),
    )(f0, f1t, rmax, rsum, cmax, csum, carg)

    conf, maskv, jids, mconf_d = outs[0], outs[1], outs[2], outs[3]
    sim = outs[4] if return_sim else None

    # ---- jittable fixed-capacity compaction (torch.where row-major semantics) ----
    maskv_b = maskv[:, :, 0] > 0                   # [N, L] bool
    jids_f = jids[:, :, 0]                         # [N, L]
    mconf_f = mconf_d[:, :, 0]                     # [N, L]

    NL = N * L
    flat_mask = maskv_b.reshape(-1)
    count = jnp.sum(flat_mask.astype(jnp.int32))
    pos = jnp.arange(NL, dtype=jnp.int32)
    keys = jnp.where(flat_mask, pos, pos + NL)     # matched flat indices sort first
    perm = jnp.argsort(keys)
    b_all = (perm // L).astype(jnp.int32)
    i_all = (perm % L).astype(jnp.int32)
    j_all = jids_f.reshape(-1)[perm]
    c_all = mconf_f.reshape(-1)[perm]

    M = int(count)                                 # single host sync; rest is jittable
    b_ids, i_ids, j_ids, mconf = b_all[:M], i_all[:M], j_all[:M], c_all[:M]

    scale = data['hw0_i'][0] / h0c                 # no 'scale0'/'scale1' in data
    mkpts0_c = jnp.stack([i_ids % w0c, i_ids // w0c], axis=1).astype(jnp.float32) * scale
    mkpts1_c = jnp.stack([j_ids % w1c, j_ids // w1c], axis=1).astype(jnp.float32) * scale

    # TODO(synk): soft_matches() sub-pixel refinement (dynamic scatter into a padded 5-D
    # sim matrix + kornia dsnt.spatial_expectation2d) has no static-shape Pallas
    # equivalent; integer-grid coordinates are returned instead.

    result = {
        'conf_matrix': conf,
        'b_ids': b_ids,
        'i_ids': i_ids,
        'j_ids': j_ids,
        'm_bids': b_ids,
        'num_matches_pred': M,
        'mkpts0_c': mkpts0_c,
        'mkpts1_c': mkpts1_c,
        'mconf': mconf,
    }
    if return_sim:
        result['sim_matrix'] = sim
    return result


# ----------------------------------------------------------------------------------
# Demo / self-check
# ----------------------------------------------------------------------------------

if __name__ == "__main__":
    # Small shapes consistent with the module: coarse grid 16x16 -> L = S = 256.
    N, C = 2, 64
    h0c = w0c = h1c = w1c = 16
    L = h0c * w0c
    S = h1c * w1c
    thr, border_rm, temperature = 0.2, 2, 0.1
    data = {
        'hw0_i': (64, 64),
        'hw1_i': (64, 64),
        'hw0_c': (h0c, w0c),
        'hw1_c': (h1c, w1c),
    }

    key = jax.random.PRNGKey(0)
    k0, k1 = jax.random.split(key)
    feat_c0 = jax.random.normal(k0, (N, L, C), dtype=jnp.float32)
    # second image = noisy copy -> strong (identity) correspondences so matches exist
    feat_c1 = feat_c0 + 0.25 * jax.random.normal(k1, (N, S, C), dtype=jnp.float32)

    out = coarse_matching_forward(
        feat_c0, feat_c1, data,
        thr=thr, border_rm=border_rm, temperature=temperature,
        return_sim=True, block_l=128)          # block_l=128 -> 2 L-tiles, exercises accumulation
    jax.block_until_ready(out['conf_matrix'])

    # --- hot-path check vs a plain-JAX reference with the same bf16 matmul precision ---
    f0b = feat_c0.astype(jnp.bfloat16)
    f1b = feat_c1.astype(jnp.bfloat16)
    sim_ref = jnp.einsum('nlc,nsc->nls', f0b, f1b,
                         preferred_element_type=jnp.float32) / (C * temperature)
    conf_ref = jax.nn.softmax(sim_ref, axis=1) * jax.nn.softmax(sim_ref, axis=2)
    assert jnp.allclose(out['sim_matrix'], sim_ref, rtol=1e-2, atol=1e-2), "sim mismatch"
    assert jnp.allclose(out['conf_matrix'], conf_ref, rtol=5e-2, atol=1e-5), "conf mismatch"

    # --- discrete-output consistency (torch semantics applied to the kernel's conf) ---
    conf_k = out['conf_matrix']
    b = border_rm
    mask = conf_k > thr
    ii = jnp.arange(L)
    h0 = ii // w0c
    w0v = ii % w0c
    row_in = (h0 >= b) & (h0 < h0c - b) & (w0v >= b) & (w0v < w0c - b)
    jj = jnp.arange(S)
    h1 = jj // w1c
    w1v = jj % w1c
    col_in = (h1 >= b) & (h1 < h1c - b) & (w1v >= b) & (w1v < w1c - b)
    mask = mask & row_in[None, :, None] & col_in[None, None, :]
    mask = mask & (conf_k == conf_k.max(axis=2, keepdims=True))
    mask = mask & (conf_k == conf_k.max(axis=1, keepdims=True))
    mask_v = mask.any(axis=2)
    rb, ri = jnp.nonzero(mask_v)
    rj = jnp.argmax(mask[rb, ri], axis=1)
    rmc = conf_k[rb, ri, rj]

    assert out['num_matches_pred'] > 0
    assert jnp.array_equal(out['b_ids'], rb)
    assert jnp.array_equal(out['i_ids'], ri)
    assert jnp.array_equal(out['j_ids'].astype(jnp.int32), rj.astype(jnp.int32))
    assert jnp.allclose(out['mconf'], rmc, rtol=1e-6, atol=1e-7)

    print("KERNEL_OK")
</pallas_src>

<mosaic_0001>
module attributes {stable_mosaic.version = 11 : i64} {
  func.func @_stats_kernel(%arg0: i32, %arg1: i32, %arg2: memref<1x128x128xbf16, #tpu.memory_space<vmem>>, %arg3: memref<1x128x256xbf16, #tpu.memory_space<vmem>>, %arg4: memref<1x128x1xf32, #tpu.memory_space<vmem>>, %arg5: memref<1x128x1xf32, #tpu.memory_space<vmem>>, %arg6: memref<1x1x256xf32, #tpu.memory_space<vmem>>, %arg7: memref<1x1x256xf32, #tpu.memory_space<vmem>>, %arg8: memref<1x1x256xi32, #tpu.memory_space<vmem>>, %arg9: memref<1x256xf32, #tpu.memory_space<vmem>>) attributes {dimension_semantics = [#tpu.dimension_semantics<parallel>, #tpu.dimension_semantics<arbitrary>], iteration_bounds = array<i64: 2, 2>, scalar_prefetch = 0 : i64, scratch_operands = 1 : i64, tpu.core_type = #tpu.core_type<tc>, window_params = [{transform_indices = @transform_0, window_bounds = array<i64: 1, 128, 128>}, {transform_indices = @transform_1, window_bounds = array<i64: 1, 128, 256>}, {transform_indices = @transform_2, window_bounds = array<i64: 1, 128, 1>}, {transform_indices = @transform_3, window_bounds = array<i64: 1, 128, 1>}, {transform_indices = @transform_4, window_bounds = array<i64: 1, 1, 256>}, {transform_indices = @transform_5, window_bounds = array<i64: 1, 1, 256>}, {transform_indices = @transform_6, window_bounds = array<i64: 1, 1, 256>}]} {
    %c0 = arith.constant 0 : index
    %c0_0 = arith.constant 0 : index
    %c0_1 = arith.constant 0 : index
    %0 = vector.load %arg2[%c0, %c0_0, %c0_1] : memref<1x128x128xbf16, #tpu.memory_space<vmem>>, vector<1x128x128xbf16>
    %1 = vector.shape_cast %0 : vector<1x128x128xbf16> to vector<128x128xbf16>
    %c0_2 = arith.constant 0 : index
    %c0_3 = arith.constant 0 : index
    %c0_4 = arith.constant 0 : index
    %2 = vector.load %arg3[%c0_2, %c0_3, %c0_4] : memref<1x128x256xbf16, #tpu.memory_space<vmem>>, vector<1x128x256xbf16>
    %3 = vector.shape_cast %2 : vector<1x128x256xbf16> to vector<128x256xbf16>
    %cst = arith.constant dense<0.000000e+00> : vector<128x256xf32>
    %4 = tpu.matmul %1, %3, %cst {dimension_numbers = #tpu.dot_dimension_numbers<[1], [0], [0], [1], [0, 0, 1, 1], [], []>} : vector<128x128xbf16>, vector<128x256xbf16>, vector<128x256xf32> -> vector<128x256xf32>
    %cst_5 = arith.constant 1.562500e-01 : f32
    %5 = vector.broadcast %cst_5 : f32 to vector<128x256xf32>
    %6 = arith.mulf %4, %5 : vector<128x256xf32>
    %cst_6 = arith.constant dense<0xFF800000> : vector<128xf32>
    %7 = vector.multi_reduction <maximumf>, %6, %cst_6 [1] : vector<128x256xf32> to vector<128xf32>
    %8 = vector.shape_cast %7 : vector<128xf32> to vector<128x1xf32>
    %9 = vector.broadcast %8 : vector<128x1xf32> to vector<128x256xf32>
    %10 = arith.subf %6, %9 : vector<128x256xf32>
    %11 = math.exp %10 : vector<128x256xf32>
    %cst_7 = arith.constant dense<0.000000e+00> : vector<128xf32>
    %12 = vector.multi_reduction <add>, %11, %cst_7 [1] : vector<128x256xf32> to vector<128xf32>
    %13 = vector.shape_cast %12 : vector<128xf32> to vector<128x1xf32>
    %c0_8 = arith.constant 0 : index
    %c0_9 = arith.constant 0 : index
    %c0_10 = arith.constant 0 : index
    %14 = vector.load %arg4[%c0_8, %c0_9, %c0_10] : memref<1x128x1xf32, #tpu.memory_space<vmem>>, vector<1x128x1xf32>
    %15 = vector.shape_cast %14 : vector<1x128x1xf32> to vector<128x1xf32>
    %16 = vector.shape_cast %8 : vector<128x1xf32> to vector<1x128x1xf32>
    tpu.vector_store %arg4[%c0_8, %c0_9, %c0_10], %16 {strides = array<i32>} : memref<1x128x1xf32, #tpu.memory_space<vmem>>, vector<1x128x1xf32>,
    %c0_11 = arith.constant 0 : index
    %c0_12 = arith.constant 0 : index
    %c0_13 = arith.constant 0 : index
    %17 = vector.load %arg5[%c0_11, %c0_12, %c0_13] : memref<1x128x1xf32, #tpu.memory_space<vmem>>, vector<1x128x1xf32>
    %18 = vector.shape_cast %17 : vector<1x128x1xf32> to vector<128x1xf32>
    %19 = vector.shape_cast %13 : vector<128x1xf32> to vector<1x128x1xf32>
    tpu.vector_store %arg5[%c0_11, %c0_12, %c0_13], %19 {strides = array<i32>} : memref<1x128x1xf32, #tpu.memory_space<vmem>>, vector<1x128x1xf32>,
    %cst_14 = arith.constant 2.000000e+00 : f32
    %20 = vector.broadcast %cst_14 : f32 to vector<128x256xf32>
    %21 = arith.mulf %20, %6 : vector<128x256xf32>
    %22 = math.log %13 : vector<128x1xf32>
    %23 = arith.addf %8, %22 : vector<128x1xf32>
    %24 = vector.broadcast %23 : vector<128x1xf32> to vector<128x256xf32>
    %25 = arith.subf %21, %24 : vector<128x256xf32>
    %cst_15 = arith.constant dense<0xFF800000> : vector<256xf32>
    %26 = vector.multi_reduction <maximumf>, %25, %cst_15 [0] : vector<128x256xf32> to vector<256xf32>
    %27 = vector.shape_cast %26 : vector<256xf32> to vector<1x256xf32>
    %28 = tpu.iota {dimensions = array<i32: 0>} : vector<128x256xi32>
    %29 = vector.broadcast %27 : vector<1x256xf32> to vector<128x256xf32>
    %30 = arith.cmpf oeq, %25, %29 : vector<128x256xf32>
    %c128_i32 = arith.constant 128 : i32
    %31 = vector.broadcast %c128_i32 : i32 to vector<128x256xi32>
    %32 = arith.select %30, %28, %31 : vector<128x256xi1>, vector<128x256xi32>
    %cst_16 = arith.constant dense<2147483647> : vector<256xi32>
    %33 = vector.multi_reduction <minsi>, %32, %cst_16 [0] : vector<128x256xi32> to vector<256xi32>
    %34 = vector.shape_cast %33 : vector<256xi32> to vector<1x256xi32>
    %c128_i32_17 = arith.constant 128 : i32
    %35 = arith.muli %arg1, %c128_i32_17 : i32
    %36 = vector.broadcast %35 : i32 to vector<1x256xi32>
    %37 = arith.addi %34, %36 : vector<1x256xi32>
    %cst_18 = arith.constant dense<0xFF800000> : vector<256xf32>
    %38 = vector.multi_reduction <maximumf>, %6, %cst_18 [0] : vector<128x256xf32> to vector<256xf32>
    %39 = vector.shape_cast %38 : vector<256xf32> to vector<1x256xf32>
    %c0_i32 = arith.constant 0 : i32
    %40 = arith.cmpi eq, %arg1, %c0_i32 : i32
    %41 = arith.extui %40 : i1 to i32
    %c0_i32_19 = arith.constant 0 : i32
    %42 = arith.cmpi ne, %41, %c0_i32_19 : i32
    scf.if %42 {
      %cst_43 = arith.constant 0xFF800000 : f32
      %73 = vector.broadcast %cst_43 : f32 to vector<1x256xf32>
      %c0_44 = arith.constant 0 : index
      %c0_45 = arith.constant 0 : index
      %c0_46 = arith.constant 0 : index
      %74 = vector.load %arg6[%c0_44, %c0_45, %c0_46] : memref<1x1x256xf32, #tpu.memory_space<vmem>>, vector<1x1x256xf32>
      %75 = vector.shape_cast %74 : vector<1x1x256xf32> to vector<1x256xf32>
      %76 = vector.shape_cast %73 : vector<1x256xf32> to vector<1x1x256xf32>
      tpu.vector_store %arg6[%c0_44, %c0_45, %c0_46], %76 {strides = array<i32>} : memref<1x1x256xf32, #tpu.memory_space<vmem>>, vector<1x1x256xf32>,
      %cst_47 = arith.constant 0.000000e+00 : f32
      %77 = vector.broadcast %cst_47 : f32 to vector<1x256xf32>
      %c0_48 = arith.constant 0 : index
      %c0_49 = arith.constant 0 : index
      %c0_50 = arith.constant 0 : index
      %78 = vector.load %arg7[%c0_48, %c0_49, %c0_50] : memref<1x1x256xf32, #tpu.memory_space<vmem>>, vector<1x1x256xf32>
      %79 = vector.shape_cast %78 : vector<1x1x256xf32> to vector<1x256xf32>
      %80 = vector.shape_cast %77 : vector<1x256xf32> to vector<1x1x256xf32>
      tpu.vector_store %arg7[%c0_48, %c0_49, %c0_50], %80 {strides = array<i32>} : memref<1x1x256xf32, #tpu.memory_space<vmem>>, vector<1x1x256xf32>,
      %c0_i32_51 = arith.constant 0 : i32
      %81 = vector.broadcast %c0_i32_51 : i32 to vector<1x256xi32>
      %c0_52 = arith.constant 0 : index
      %c0_53 = arith.constant 0 : index
      %c0_54 = arith.constant 0 : index
      %82 = vector.load %arg8[%c0_52, %c0_53, %c0_54] : memref<1x1x256xi32, #tpu.memory_space<vmem>>, vector<1x1x256xi32>
      %83 = vector.shape_cast %82 : vector<1x1x256xi32> to vector<1x256xi32>
      %84 = vector.shape_cast %81 : vector<1x256xi32> to vector<1x1x256xi32>
      tpu.vector_store %arg8[%c0_52, %c0_53, %c0_54], %84 {strides = array<i32>} : memref<1x1x256xi32, #tpu.memory_space<vmem>>, vector<1x1x256xi32>,
      %cst_55 = arith.constant 0xFF800000 : f32
      %85 = vector.broadcast %cst_55 : f32 to vector<1x256xf32>
      %c0_56 = arith.constant 0 : index
      %c0_57 = arith.constant 0 : index
      %86 = vector.load %arg9[%c0_56, %c0_57] : memref<1x256xf32, #tpu.memory_space<vmem>>, vector<1x256xf32>
      tpu.vector_store %arg9[%c0_56, %c0_57], %85 {strides = array<i32>} : memref<1x256xf32, #tpu.memory_space<vmem>>, vector<1x256xf32>,
    } else {
    }
    %c0_20 = arith.constant 0 : index
    %c0_21 = arith.constant 0 : index
    %c0_22 = arith.constant 0 : index
    %43 = vector.load %arg6[%c0_20, %c0_21, %c0_22] : memref<1x1x256xf32, #tpu.memory_space<vmem>>, vector<1x1x256xf32>
    %44 = vector.shape_cast %43 : vector<1x1x256xf32> to vector<1x256xf32>
    %45 = arith.maximumf %44, %39 : vector<1x256xf32>
    %c0_23 = arith.constant 0 : index
    %c0_24 = arith.constant 0 : index
    %c0_25 = arith.constant 0 : index
    %46 = vector.load %arg7[%c0_23, %c0_24, %c0_25] : memref<1x1x256xf32, #tpu.memory_space<vmem>>, vector<1x1x256xf32>
    %47 = vector.shape_cast %46 : vector<1x1x256xf32> to vector<1x256xf32>
    %48 = arith.subf %44, %45 : vector<1x256xf32>
    %49 = math.exp %48 : vector<1x256xf32>
    %50 = arith.mulf %47, %49 : vector<1x256xf32>
    %51 = vector.broadcast %45 : vector<1x256xf32> to vector<128x256xf32>
    %52 = arith.subf %6, %51 : vector<128x256xf32>
    %53 = math.exp %52 : vector<128x256xf32>
    %cst_26 = arith.constant dense<0.000000e+00> : vector<256xf32>
    %54 = vector.multi_reduction <add>, %53, %cst_26 [0] : vector<128x256xf32> to vector<256xf32>
    %55 = vector.shape_cast %54 : vector<256xf32> to vector<1x256xf32>
    %56 = arith.addf %50, %55 : vector<1x256xf32>
    %c0_27 = arith.constant 0 : index
    %c0_28 = arith.constant 0 : index
    %c0_29 = arith.constant 0 : index
    %57 = vector.load %arg7[%c0_27, %c0_28, %c0_29] : memref<1x1x256xf32, #tpu.memory_space<vmem>>, vector<1x1x256xf32>
    %58 = vector.shape_cast %57 : vector<1x1x256xf32> to vector<1x256xf32>
    %59 = vector.shape_cast %56 : vector<1x256xf32> to vector<1x1x256xf32>
    tpu.vector_store %arg7[%c0_27, %c0_28, %c0_29], %59 {strides = array<i32>} : memref<1x1x256xf32, #tpu.memory_space<vmem>>, vector<1x1x256xf32>,
    %c0_30 = arith.constant 0 : index
    %c0_31 = arith.constant 0 : index
    %c0_32 = arith.constant 0 : index
    %60 = vector.load %arg6[%c0_30, %c0_31, %c0_32] : memref<1x1x256xf32, #tpu.memory_space<vmem>>, vector<1x1x256xf32>
    %61 = vector.shape_cast %60 : vector<1x1x256xf32> to vector<1x256xf32>
    %62 = vector.shape_cast %45 : vector<1x256xf32> to vector<1x1x256xf32>
    tpu.vector_store %arg6[%c0_30, %c0_31, %c0_32], %62 {strides = array<i32>} : memref<1x1x256xf32, #tpu.memory_space<vmem>>, vector<1x1x256xf32>,
    %c0_33 = arith.constant 0 : index
    %c0_34 = arith.constant 0 : index
    %63 = vector.load %arg9[%c0_33, %c0_34] : memref<1x256xf32, #tpu.memory_space<vmem>>, vector<1x256xf32>
    %64 = arith.cmpf ogt, %27, %63 : vector<1x256xf32>
    %c0_35 = arith.constant 0 : index
    %c0_36 = arith.constant 0 : index
    %c0_37 = arith.constant 0 : index
    %65 = vector.load %arg8[%c0_35, %c0_36, %c0_37] : memref<1x1x256xi32, #tpu.memory_space<vmem>>, vector<1x1x256xi32>
    %66 = vector.shape_cast %65 : vector<1x1x256xi32> to vector<1x256xi32>
    %67 = arith.select %64, %37, %66 : vector<1x256xi1>, vector<1x256xi32>
    %c0_38 = arith.constant 0 : index
    %c0_39 = arith.constant 0 : index
    %c0_40 = arith.constant 0 : index
    %68 = vector.load %arg8[%c0_38, %c0_39, %c0_40] : memref<1x1x256xi32, #tpu.memory_space<vmem>>, vector<1x1x256xi32>
    %69 = vector.shape_cast %68 : vector<1x1x256xi32> to vector<1x256xi32>
    %70 = vector.shape_cast %67 : vector<1x256xi32> to vector<1x1x256xi32>
    tpu.vector_store %arg8[%c0_38, %c0_39, %c0_40], %70 {strides = array<i32>} : memref<1x1x256xi32, #tpu.memory_space<vmem>>, vector<1x1x256xi32>,
    %71 = arith.maximumf %63, %27 : vector<1x256xf32>
    %c0_41 = arith.constant 0 : index
    %c0_42 = arith.constant 0 : index
    %72 = vector.load %arg9[%c0_41, %c0_42] : memref<1x256xf32, #tpu.memory_space<vmem>>, vector<1x256xf32>
    tpu.vector_store %arg9[%c0_41, %c0_42], %71 {strides = array<i32>} : memref<1x256xf32, #tpu.memory_space<vmem>>, vector<1x256xf32>,
    return
  }
  func.func @transform_0(%arg0: i32, %arg1: i32) -> (i32, i32, i32) {
    %c0_i32 = arith.constant 0 : i32
    %c0_i32_0 = arith.constant 0 : i32
    return %arg0, %arg1, %c0_i32 : i32, i32, i32
  }
  func.func @transform_1(%arg0: i32, %arg1: i32) -> (i32, i32, i32) {
    %c0_i32 = arith.constant 0 : i32
    %c0_i32_0 = arith.constant 0 : i32
    %c0_i32_1 = arith.constant 0 : i32
    return %arg0, %c0_i32, %c0_i32_0 : i32, i32, i32
  }
  func.func @transform_2(%arg0: i32, %arg1: i32) -> (i32, i32, i32) {
    %c0_i32 = arith.constant 0 : i32
    %c0_i32_0 = arith.constant 0 : i32
    return %arg0, %arg1, %c0_i32 : i32, i32, i32
  }
  func.func @transform_3(%arg0: i32, %arg1: i32) -> (i32, i32, i32) {
    %c0_i32 = arith.constant 0 : i32
    %c0_i32_0 = arith.constant 0 : i32
    return %arg0, %arg1, %c0_i32 : i32, i32, i32
  }
  func.func @transform_4(%arg0: i32, %arg1: i32) -> (i32, i32, i32) {
    %c0_i32 = arith.constant 0 : i32
    %c0_i32_0 = arith.constant 0 : i32
    %c0_i32_1 = arith.constant 0 : i32
    return %arg0, %c0_i32, %c0_i32_0 : i32, i32, i32
  }
  func.func @transform_5(%arg0: i32, %arg1: i32) -> (i32, i32, i32) {
    %c0_i32 = arith.constant 0 : i32
    %c0_i32_0 = arith.constant 0 : i32
    %c0_i32_1 = arith.constant 0 : i32
    return %arg0, %c0_i32, %c0_i32_0 : i32, i32, i32
  }
  func.func @transform_6(%arg0: i32, %arg1: i32) -> (i32, i32, i32) {
    %c0_i32 = arith.constant 0 : i32
    %c0_i32_0 = arith.constant 0 : i32
    %c0_i32_1 = arith.constant 0 : i32
    return %arg0, %c0_i32, %c0_i32_0 : i32, i32, i32
  }
}

</mosaic_0001>

<bundles_post_ra>
// kernel: tpu_custom_call.1
= control target key start
LH: loop header
LB: loop body
LE: loop exit
PB: predicated region body
PF: predicated region fallthrough
CT: control target
= control target key end

     0   :  { %s3707_s0 = inlined_call_operand.hbm [shape: bf16[2,256,128], index: 0, kind: input, shape index: {}]   ;;  %s3708_s1 = inlined_call_operand.hbm [shape: bf16[2,128,256], index: 1, kind: input, shape index: {}]   ;;  %s3709_s2 = inlined_call_operand.vmem [shape: f32[2,256,1], index: 2, kind: output, shape index: {0}]   ;;  %s3710_s3 = inlined_call_operand.vmem [shape: f32[2,256,1], index: 3, kind: output, shape index: {1}]   ;;  %s3711_s4 = inlined_call_operand.hbm [shape: f32[2,1,256], index: 4, kind: output, shape index: {2}]   ;;  %s3712_s5 = inlined_call_operand.hbm [shape: f32[2,1,256], index: 5, kind: output, shape index: {3}]   ;;  %s3713_s6 = inlined_call_operand.hbm [shape: s32[2,1,256], index: 6, kind: output, shape index: {4}]  }
   0x1   :  { %3750 = sst [smem:[#allocation52_spill]] %s3707_s0 }
   0x2   :  { %3751 = sst [smem:[#allocation53_spill]] %s3713_s6 }
   0x3   :  { %12 = vsyncpa [#allocation4], 0 }
   0x4   :  { %14 = vsyncpa [#allocation4 + $0x1], 0 }
   0x5   :  { %15 = vsyncpa [#allocation7], 0 }
   0x6   :  { %17 = vsyncpa [#allocation7 + $0x1], 0 }
   0x7   :  { %18 = vsyncpa [#allocation5], 0 }
   0x8   :  { %20 = vsyncpa [#allocation5 + $0x1], 0 }
   0x9   :  { %21 = vsyncpa [#allocation10], 0 }
   0xa   :  { %23 = vsyncpa [#allocation10 + $0x1], 0  ;;  %s2542_s21 = smov 0   ;;  %s2544_s22 = smov 0  }
   0xb   :  { %s2546_s23 = smov 0   ;;  %s2548_s24 = smov 0  }
   0xc   :  { %s2550_s25 = smov 0   ;;  %s2552_s26 = smov 0  }
   0xd   :  { %s2554_s27 = smov 0   ;;  %s2556_s28 = smov 0  }
   0xe   :  { %s2558_s29 = smov 0   ;;  %s2560_s30 = smov 0  }
   0xf   :  { %s2562_s7 = smov 0  }
  0x10 LB: > { %3752 = sst [smem:[#allocation16_spill]] %s2466_s23  ;;  %s2596_s8 = sadd.s32 4294967295, %s2498_s7   ;;  %s2498_s7 = sphi %s2562_s7, %s29_s7   ;;  %s2494_s30 = sphi %s2560_s30, %s3851_s30   ;;  %s2490_s29 = sphi %s2558_s29, %s3856_s29   ;;  %s2486_s28 = sphi %s2556_s28, %s3849_s28   ;;  %s2482_s27 = sphi %s2554_s27, %s3848_s27   ;;  %s2478_s26 = sphi %s2552_s26, %s3847_s26   ;;  %s2474_s25 = sphi %s2550_s25, %s3855_s25   ;;  %s2470_s24 = sphi %s2548_s24, %s3854_s24   ;;  %s2466_s23 = sphi %s2546_s23, %s3845_s23   ;;  %s2462_s22 = sphi %s2544_s22, %s3853_s22   ;;  %s2458_s21 = sphi %s2542_s21, %s3852_s21  }
  0x11   : > { %3753 = sst [smem:[#allocation17_spill]] %s2478_s26  ;;  %s38_s9 = sadd.s32 1, %s2490_s29 }
  0x12   : > { %3754 = sst [smem:[#allocation18_spill]] %s2490_s29  ;;  %p39_p0 = scmp.ge.s32.totalorder %s38_s9, 2 }
  0x13   : > { %3755 = sst [smem:[#allocation19_spill]] %s2494_s30  ;;  %s41_s10 = sadd.s32 1, %s2494_s30 }
  0x14   : > { %s50_s11 = sadd.s32 1, %s2478_s26  ;;  %p57_p1 = scmp.ne.s32.totalorder %s2478_s26, %s2474_s25 }
  0x15   : > { %s3858_s9 = smov (%p39_p0, %s38_s9), 0  ;;  %s3860_s10 = smov (!%p39_p0, %s41_s10), %s2494_s30 }
  0x16   : > { %3756 = sst [smem:[#allocation20_spill]] %s3858_s9  ;;  %s46_s12 = ssub.s32 %s2490_s29, %s3858_s9 }
  0x17   : > { %p58_p2 = scmp.eq.s32.totalorder %s2498_s7, 0  ;;  %p43_p3 = scmp.ge.s32.totalorder %s3860_s10, 2 }
  0x18   : > { %p63_p4 = scmp.ne.s32.totalorder %s2474_s25, %s2470_s24  ;;  %p64_p6 = scmp.eq.s32.totalorder %s2596_s8, 0 }
  0x19   : > { %p2612_p5 = por %p58_p2, %p57_p1  ;;  %s3862_s10 = smov (%p43_p3, %s3860_s10), 0 }
  0x1a   : > { %3758 = sst [smem:[#allocation21_spill]] %s3862_s10  ;;  %p2621_p7 = por %p64_p6, %p63_p4 }
  0x1b   : > { %s2627_s15 = ssub.s32 %s2494_s30, %s3862_s10  ;;  %p1993_p8 = scmp.lt.s32.totalorder %s2498_s7, 4 }
  0x1c   : > { %s47_s16 = sor.u32 %s46_s12, %s2627_s15  ;;  %p74_p9 = scmp.eq.s32.totalorder %s2627_s15, 0 }
  0x1d   : > { %p48_p10 = scmp.eq.s32.totalorder %s47_s16, 0  ;;  %s247_s17 = sand.u32 1, %s2478_s26  }
  0x1e   : > { %s1800_s18 = sshll.u32 %s247_s17, 6  ;;  %s1801_s20 = sshll.u32 %s2490_s29, 4 }
  0x1f   : > { %s2634_s19 = scalar_select %p48_p10, %s2478_s26, %s50_s11  }
  0x20   : > { %s1802_s24 = sshll.u32 %s2494_s30, 5  ;;  %s251_s9 = scalar_lea.vmem [#allocation3], %s1800_s18 }
  0x21   : > { %3760 = sst [smem:[#allocation22_spill]] %s2634_s19  ;;  %s261_s6 = sshll.u32 %s251_s9, 4  ;;  %s262_s6 = int_to_ptr.vmem [resolvable:$true] %s261_s6 }
  0x22   : > { %s256_s10 = sadd.s32 %s1802_s24, %s1801_s20  ;;  %p1977_p11 = pnand %p1993_p8, %p2612_p5 }
  0x23   : > { %s1803_s12 = sshll.u32 %s256_s10, 2  ;;  %s3761_s0 = sld [smem:[#allocation52_spill]] }
  0x24   : > { %s248_s20 = scalar_lea.sflag [#allocation4], %s247_s17  ;;  %s2500_s24 = smov 64  }
  0x25   : > { %s2501_s29 = smov 4   ;;  %p1807_p12 = scmp.ge.s32.totalorder %s2498_s7, 1 }
  0x26   : > { %p291_p13 = scmp.lt.s32.totalorder %s2498_s7, 5  ;;  %s3718_s13 = sadd.s32 4294967294, %s2498_s7  }
  0x27   : > { %s76_s11 = sadd.s32 1, %s2466_s23  ;;  %p83_p1 = scmp.ne.s32.totalorder %s2466_s23, %s2462_s22 }
  0x28   : > { %p2647_p0 = pnand %p1807_p12, %p291_p13  ;;  %p89_p4 = scmp.ne.s32.totalorder %s2462_s22, %s2458_s21 }
  0x29   : > { %s258_s18 = scalar_lea.hbm %s3761_s0, %s1803_s12  ;;  %p2662_p3 = por %p83_p1, %p58_p2 }
  0x2a   : > { %s259_s9 = sshll.u32 %s258_s18, 4  ;;  %p169_p5 = scmp.eq.s32.totalorder %s2596_s8, 3  ;;  %s260_s9 = int_to_ptr.hbm [resolvable:$true] %s259_s9 }
  0x2b   : > { %1979 = dma.hbm_to_vmem [thread:$0]  (!%p1977_p11), %s260_s9, 1024, %s262_s6, %s248_s20, %s2500_s24, %s2500_s24, %s2501_s29  }
  0x2c   : > { %s2658_s12 = scalar_select %p74_p9, %s2466_s23, %s76_s11  }
  0x2d   : > { %p175_p10 = scmp.eq.s32.totalorder %s3718_s13, 3  ;;  %p2673_p11 = por %p89_p4, %p64_p6 }
  0x2e   : > { %3763 = sst [smem:[#allocation23_spill]] %s2658_s12  ;;  %s271_s29 = sand.u32 1, %s2466_s23  }
  0x2f   : > { %p2678_p12 = por %p169_p5, %p83_p1  ;;  %p2682_p2 = por %p175_p10, %p89_p4 }
  0x30   : > { %s1804_s18 = sshll.u32 %s271_s29, 7  ;;  %s1925_s9 = sshll.u32 %s2494_s30, 7 }
  0x31   : > { %s280_s11 = scalar_lea.hbm %s3708_s1, %s1925_s9  ;;  %s275_s13 = scalar_lea.vmem [#allocation6], %s1804_s18 }
  0x32   : > { %s283_s0 = sshll.u32 %s275_s13, 4  ;;  %s281_s19 = sshll.u32 %s280_s11, 4  ;;  %s284_s0 = int_to_ptr.vmem [resolvable:$true] %s283_s0  ;;  %s282_s19 = int_to_ptr.hbm [resolvable:$true] %s281_s19 }
  0x33   : > { %p1980_p6 = pnand %p1993_p8, %p2662_p3  ;;  %s272_s26 = scalar_lea.sflag [#allocation7], %s271_s29 }
  0x34   : > { %s2502_s12 = smov 128   ;;  %s2503_s23 = smov 8  }
  0x35   : > { %1982 = dma.hbm_to_vmem [thread:$0]  (!%p1980_p6), %s282_s19, 2048, %s284_s0, %s272_s26, %s2502_s12, %s2502_s12, %s2503_s23  }
  0x36   : > { %295 = sbr.rel (%p2647_p0) target bundleno = 710 (0x2c6), region = 28 }
  0x3b   : > { %s297_s30 = sand.u32 1, %s2474_s25  }
  0x3c   : > { %s1808_s20 = sshll.u32 %s297_s30, 6  ;;  %s298_s9 = scalar_lea.sflag [#allocation4], %s297_s30 }
  0x3d   : > { %s2697_s18 = scalar_lea.vmem [#allocation3], %s1808_s20 }
  0x3e   : > { %2441 = dma.done.wait (%p2621_p7), %s298_s9, 1024  }
  0x3f   : > { %2443 = vsyncadd (%p2621_p7), %s298_s9, 4294966272  ;;  %s2704_s13 = sand.u32 1, %s2462_s22  }
  0x40   : > { %s1809_s0 = sshll.u32 %s2704_s13, 7  ;;  %s308_s23 = scalar_lea.sflag [#allocation7], %s2704_s13 }
  0x41   : > { %s2708_s26 = scalar_lea.vmem [#allocation6], %s1809_s0 }
  0x42   : > { %2445 = dma.done.wait (%p2673_p11), %s308_s23, 2048  }
  0x43   : > { %2447 = vsyncadd (%p2673_p11), %s308_s23, 4294965248  ;;  %s2715_s30 = sshll.u32 %s2704_s13, 1  ;;  %v1909_v0 = vld [vmem:[%s2708_s26 + $0x70] sm:$0xf]  ;;  %v1949_v1 = vld [vmem:[%s2708_s26 + $0x74] sm:$0xf0] }
  0x44   : > { %v1948_v2 = vld [vmem:[%s2708_s26 + $0x74] sm:$0xf]  ;;  %v1910_v3 = vor.u32 %v1949_v1, %v1909_v0  ;;  %v1911_v4 = vld [vmem:[%s2708_s26 + $0x78] sm:$0xf0]  ;;  %v1901_v5 = vld [vmem:[%s2708_s26 + $0x60] sm:$0xf] }
  0x45   : > { %v1947_v6 = vld [vmem:[%s2708_s26 + $0x64] sm:$0xf0]  ;;  %v1914_v7 = vor.u32 %v1948_v2, %v1911_v4  ;;  %v1946_v8 = vld [vmem:[%s2708_s26 + $0x64] sm:$0xf]  ;;  %v1903_v9 = vld [vmem:[%s2708_s26 + $0x68] sm:$0xf0] }
  0x46   : > { %555 = vmatpush.bf16.msra.mxu0 %v1910_v3  ;;  %1950 = vmatpush.bf16.msra.mxu2 %v1910_v3  ;;  %v1902_v10 = vor.u32 %v1947_v6, %v1901_v5  ;;  %v1906_v11 = vor.u32 %v1946_v8, %v1903_v9  ;;  %v1893_v12 = vld [vmem:[%s2708_s26 + $0x50] sm:$0xf]  ;;  %v1945_v13 = vld [vmem:[%s2708_s26 + $0x54] sm:$0xf0]  ;;  %v1944_v14 = vld [vmem:[%s2708_s26 + $0x54] sm:$0xf] }
  0x47   : > { %604 = vmatpush.bf16.msra.mxu1 %v1914_v7  ;;  %1958 = vmatpush.bf16.msra.mxu3 %v1914_v7  ;;  %v1895_v15 = vld [vmem:[%s2708_s26 + $0x58] sm:$0xf0]  ;;  %v1894_v16 = vor.u32 %v1945_v13, %v1893_v12  ;;  %v1885_v18 = vld [vmem:[%s2708_s26 + $0x40] sm:$0xf]  ;;  %v1943_v19 = vld [vmem:[%s2708_s26 + $0x44] sm:$0xf0] }
  0x48   : > { %v1898_v17 = vor.u32 %v1944_v14, %v1895_v15  ;;  %v1942_v20 = vld [vmem:[%s2708_s26 + $0x44] sm:$0xf]  ;;  %v1887_v21 = vld [vmem:[%s2708_s26 + $0x48] sm:$0xf0]  ;;  %v1886_v22 = vor.u32 %v1943_v19, %v1885_v18  ;;  %v1877_v24 = vld [vmem:[%s2708_s26 + $0x30] sm:$0xf] }
  0x49   : > { %v1890_v23 = vor.u32 %v1942_v20, %v1887_v21  ;;  %v1941_v25 = vld [vmem:[%s2708_s26 + $0x34] sm:$0xf0]  ;;  %v1940_v26 = vld [vmem:[%s2708_s26 + $0x34] sm:$0xf]  ;;  %v1879_v27 = vld [vmem:[%s2708_s26 + $0x38] sm:$0xf0] }
  0x4a   : > { %556 = vmatpush.bf16.msra.mxu0 %v1902_v10  ;;  %1951 = vmatpush.bf16.msra.mxu2 %v1902_v10  ;;  %v1878_v28 = vor.u32 %v1941_v25, %v1877_v24  ;;  %v1882_v29 = vor.u32 %v1940_v26, %v1879_v27  ;;  %v1869_v30 = vld [vmem:[%s2708_s26 + $0x20] sm:$0xf]  ;;  %v1939_v31 = vld [vmem:[%s2708_s26 + $0x24] sm:$0xf0]  ;;  %v1938_v32 = vld [vmem:[%s2708_s26 + $0x24] sm:$0xf] }
  0x4b   : > { %605 = vmatpush.bf16.msra.mxu1 %v1906_v11  ;;  %1959 = vmatpush.bf16.msra.mxu3 %v1906_v11  ;;  %v1871_v33 = vld [vmem:[%s2708_s26 + $0x28] sm:$0xf0]  ;;  %v1870_v34 = vor.u32 %v1939_v31, %v1869_v30  ;;  %v1861_v36 = vld [vmem:[%s2708_s26 + $0x10] sm:$0xf]  ;;  %v1937_v37 = vld [vmem:[%s2708_s26 + $0x14] sm:$0xf0] }
  0x4c   : > { %v1874_v35 = vor.u32 %v1938_v32, %v1871_v33  ;;  %v1936_v38 = vld [vmem:[%s2708_s26 + $0x14] sm:$0xf]  ;;  %v1863_v39 = vld [vmem:[%s2708_s26 + $0x18] sm:$0xf0]  ;;  %v1862_v40 = vor.u32 %v1937_v37, %v1861_v36  ;;  %v1853_v42 = vld [vmem:[%s2708_s26] sm:$0xf] }
  0x4d   : > { %v1866_v41 = vor.u32 %v1936_v38, %v1863_v39  ;;  %v1935_v43 = vld [vmem:[%s2708_s26 + $0x4] sm:$0xf0]  ;;  %v1934_v44 = vld [vmem:[%s2708_s26 + $0x4] sm:$0xf]  ;;  %v1855_v45 = vld [vmem:[%s2708_s26 + $0x8] sm:$0xf0] }
  0x4e   : > { %557 = vmatpush.bf16.msra.mxu0 %v1894_v16  ;;  %1952 = vmatpush.bf16.msra.mxu2 %v1894_v16  ;;  %v1854_v46 = vor.u32 %v1935_v43, %v1853_v42  ;;  %v1858_v47 = vor.u32 %v1934_v44, %v1855_v45  ;;  %v1926_v48 = vld [vmem:[%s2697_s18] sm:$0xff]  ;;  %v1927_v50 = vld [vmem:[%s2697_s18 + $0x8] sm:$0xff]  ;;  %v1928_v52 = vld [vmem:[%s2697_s18 + $0x10] sm:$0xff]  ;;  %s1813_s14 = sshll.u32 %s2482_s27, 4  ;;  %p376_p7 = scmp.lt.s32.totalorder %s2486_s28, 1  ;;  %vm877_vm0 = vcmask 7168  }
  0x4f   : > { %606 = vmatpush.bf16.msra.mxu1 %v1898_v17  ;;  %1960 = vmatpush.bf16.msra.mxu3 %v1898_v17  ;;  %v1930_v49 = vld [vmem:[%s2697_s18 + $0x20] sm:$0xff]  ;;  %v1931_v51 = vld [vmem:[%s2697_s18 + $0x28] sm:$0xff]  ;;  %v1932_v53 = vld [vmem:[%s2697_s18 + $0x30] sm:$0xff]  ;;  %p378_p8 = scmp.lt.s32.totalorder %s1813_s14, 31  ;;  %s3462_s0 = scalar_lea.vmem [#allocation8], %s2715_s30 }
  0x50   : > { %v1929_v54 = vld [vmem:[%s2697_s18 + $0x18] sm:$0xff]  ;;  %s377_s19 = scalar_select %p376_p7, %s2486_s28, 1 }
  0x51   : > { %v1933_v55 = vld [vmem:[%s2697_s18 + $0x38] sm:$0xff]  ;;  %s3864_s14 = smov (!%p378_p8, %s1813_s14), 31  ;;  %s1915_s18 = sshll.u32 %s2482_s27, 7 }
  0x52   : > { %558 = vmatpush.bf16.msra.mxu0 %v1886_v22  ;;  %1953 = vmatpush.bf16.msra.mxu2 %v1886_v22  ;;  %s1814_s10 = sshll.u32 %s377_s19, 5  ;;  %s3465_s23 = scalar_lea.vmem [#allocation9], %s2715_s30 }
  0x53   : > { %607 = vmatpush.bf16.msra.mxu1 %v1890_v23  ;;  %1961 = vmatpush.bf16.msra.mxu3 %v1890_v23  ;;  %s2892_s12 = sadd.s32 %s1814_s10, %s3864_s14  ;;  %s3468_s26 = scalar_lea.vmem [#allocation11], %s2715_s30 }
  0x54   : > { %s1815_s17 = sshll.u32 %s2892_s12, 3  ;;  %p1916_p9 = scmp.ne.s32.totalorder %s2482_s27, 0 }
  0x55   : > { %s2900_s24 = scalar_lea.vmem %s3709_s2, %s1815_s17  ;;  %s3051_s9 = scalar_lea.vmem %s3710_s3, %s1815_s17 }
  0x56   : > { %559 = vmatpush.bf16.msra.mxu0 %v1878_v28  ;;  %1954 = vmatpush.bf16.msra.mxu2 %v1878_v28 }
  0x57   : > { %608 = vmatpush.bf16.msra.mxu1 %v1882_v29  ;;  %1962 = vmatpush.bf16.msra.mxu3 %v1882_v29 }
  0x5a   : > { %560 = vmatpush.bf16.msra.mxu0 %v1870_v34  ;;  %1955 = vmatpush.bf16.msra.mxu2 %v1870_v34 }
  0x5b   : > { %609 = vmatpush.bf16.msra.mxu1 %v1874_v35  ;;  %1963 = vmatpush.bf16.msra.mxu3 %v1874_v35 }
  0x5e   : > { %561 = vmatpush.bf16.msra.mxu0 %v1862_v40  ;;  %1956 = vmatpush.bf16.msra.mxu2 %v1862_v40 }
  0x5f   : > { %610 = vmatpush.bf16.msra.mxu1 %v1866_v41  ;;  %1964 = vmatpush.bf16.msra.mxu3 %v1866_v41 }
  0x62   : > { %562 = vmatpush.bf16.msra.mxu0 %v1854_v46  ;;  %1957 = vmatpush.bf16.msra.mxu2 %v1854_v46 }
  0x63   : > { %611 = vmatpush.bf16.msra.mxu1 %v1858_v47  ;;  %1965 = vmatpush.bf16.msra.mxu3 %v1858_v47 }
  0x65   : > { %563 = vmatmul.bf16.vlgmr.msra.gmra.mxu0 %v1926_v48  ;;  %583 = vmatmul.bf16.vlgmr.msra.gmra.mxu2 %v1930_v49 }
  0x66   : > { %612 = vmatmul.bf16.vlgmr.msra.gmra.mxu1 %v1926_v48  ;;  %632 = vmatmul.bf16.vlgmr.msra.gmra.mxu3 %v1930_v49 }
  0x75   : > { %568 = vmatmul.bf16.gmra.mxu0 %v1927_v50  ;;  %588 = vmatmul.bf16.gmra.mxu2 %v1931_v51 }
  0x76   : > { %617 = vmatmul.bf16.gmra.mxu1 %v1927_v50  ;;  %637 = vmatmul.bf16.gmra.mxu3 %v1931_v51 }
  0x85   : > { %573 = vmatmul.bf16.gmra.mxu0 %v1928_v52  ;;  %593 = vmatmul.bf16.gmra.mxu2 %v1932_v53 }
  0x86   : > { %622 = vmatmul.bf16.gmra.mxu1 %v1928_v52  ;;  %642 = vmatmul.bf16.gmra.mxu3 %v1932_v53 }
  0x95   : > { %578 = vmatmul.bf16.gmra.mxu0 %v1929_v54  ;;  %598 = vmatmul.bf16.gmra.mxu2 %v1933_v55 }
  0x96   : > { %627 = vmatmul.bf16.gmra.mxu1 %v1929_v54  ;;  %647 = vmatmul.bf16.gmra.mxu3 %v1933_v55 }
  0xe2   : > { %v564_v56 = vpop.f32.mrf.mxu0 }
  0xe3   : > { %v2757_v57 = vmul.f32 0.15625, %v564_v56  ;;  %v613_v58 = vpop.f32.mrf.mxu1 }
  0xe4   : > { %v2759_v59 = vmul.f32 0.15625, %v613_v58 }
  0xe5   : > { %3768 = vst [vmem:[#allocation24_spill] sm:$0xff] %v2757_v57 }
  0xe6   : > { %3769 = vst [vmem:[#allocation25_spill] sm:$0xff] %v2759_v59  ;;  %v685_v60 = vmax.f32 %v2757_v57, %v2759_v59 }
  0xe8   : > { %686 = vmax.xlane.f32.xlu0 %v685_v60  ;;  %v584_v61 = vpop.f32.mrf.mxu2 }
  0xe9   : > { %v2763_v62 = vmul.f32 0.15625, %v584_v61  ;;  %v633_v63 = vpop.f32.mrf.mxu3 }
  0xea   : > { %v2765_v0 = vmul.f32 0.15625, %v633_v63  ;;  %v566_v1 = vpop.f32.mrf.mxu0 }
  0xeb   : > { %3770 = vst [vmem:[#allocation26_spill] sm:$0xff] %v2763_v62  ;;  %v2767_v2 = vmul.f32 0.15625, %v566_v1  ;;  %v615_v3 = vpop.f32.mrf.mxu1 }
  0xec   : > { %3771 = vst [vmem:[#allocation27_spill] sm:$0xff] %v2765_v0  ;;  %v2769_v4 = vmul.f32 0.15625, %v615_v3  ;;  %v709_v5 = vmax.f32 %v2763_v62, %v2765_v0 }
  0xed   : > { %3772 = vst [vmem:[#allocation28_spill] sm:$0xff] %v2767_v2 }
  0xee   : > { %3773 = vst [vmem:[#allocation29_spill] sm:$0xff] %v2769_v4  ;;  %710 = vmax.xlane.f32.xlu2 %v709_v5  ;;  %v688_v6 = vmax.f32 %v2767_v2, %v2769_v4 }
  0xf0   : > { %689 = vmax.xlane.f32.xlu0 %v688_v6  ;;  %v586_v7 = vpop.f32.mrf.mxu2 }
  0xf1   : > { %v635_v8 = vpop.f32.mrf.mxu3  ;;  %v2775_v9 = vmul.f32 0.15625, %v586_v7 }
  0xf2   : > { %v2777_v10 = vmul.f32 0.15625, %v635_v8  ;;  %v569_v11 = vpop.f32.mrf.mxu0 }
  0xf3   : > { %3774 = vst [vmem:[#allocation30_spill] sm:$0xff] %v2775_v9  ;;  %v2779_v12 = vmul.f32 0.15625, %v569_v11  ;;  %v618_v13 = vpop.f32.mrf.mxu1 }
  0xf4   : > { %3775 = vst [vmem:[#allocation31_spill] sm:$0xff] %v2777_v10  ;;  %v2781_v14 = vmul.f32 0.15625, %v618_v13  ;;  %v712_v15 = vmax.f32 %v2775_v9, %v2777_v10 }
  0xf5   : > { %3776 = vst [vmem:[#allocation32_spill] sm:$0xff] %v2779_v12  ;;  %v1227_v45 = vmax.f32 %v2757_v57, %v2779_v12 }
  0xf6   : > { %3777 = vst [vmem:[#allocation33_spill] sm:$0xff] %v2781_v14  ;;  %v691_v16 = vmax.f32 %v2779_v12, %v2781_v14  ;;  %v1248_v47 = vmax.f32 %v2759_v59, %v2781_v14 }
  0xf8   : > { %713 = vmax.xlane.f32.xlu0 %v712_v15  ;;  %692 = vmax.xlane.f32.xlu1 %v691_v16  ;;  %v589_v17 = vpop.f32.mrf.mxu2 }
  0xf9   : > { %v2787_v18 = vmul.f32 0.15625, %v589_v17  ;;  %v638_v19 = vpop.f32.mrf.mxu3 }
  0xfa   : > { %v2789_v20 = vmul.f32 0.15625, %v638_v19  ;;  %v571_v21 = vpop.f32.mrf.mxu0 }
  0xfb   : > { %3778 = vst [vmem:[#allocation34_spill] sm:$0xff] %v2787_v18  ;;  %v620_v22 = vpop.f32.mrf.mxu1  ;;  %v2793_v26 = vmul.f32 0.15625, %v571_v21 }
  0xfc   : > { %3779 = vst [vmem:[#allocation35_spill] sm:$0xff] %v2789_v20  ;;  %v715_v23 = vmax.f32 %v2787_v18, %v2789_v20  ;;  %v2795_v27 = vmul.f32 0.15625, %v620_v22 }
  0xfd   : > { %3780 = vst [vmem:[#allocation36_spill] sm:$0xff] %v2793_v26  ;;  %v1228_v1 = vmax.f32 %v2767_v2, %v2793_v26 }
  0xfe   : > { %3781 = vst [vmem:[#allocation37_spill] sm:$0xff] %v2795_v27  ;;  %v694_v32 = vmax.f32 %v2793_v26, %v2795_v27  ;;  %v1249_v7 = vmax.f32 %v2769_v4, %v2795_v27 }
 0x100   : > { %716 = vmax.xlane.f32.xlu1 %v715_v23  ;;  %v591_v24 = vpop.f32.mrf.mxu2 }
 0x101   : > { %v640_v25 = vpop.f32.mrf.mxu3  ;;  %v2821_v48 = vmul.f32 0.15625, %v591_v24 }
 0x102   : > { %v574_v28 = vpop.f32.mrf.mxu0  ;;  %v2823_v49 = vmul.f32 0.15625, %v640_v25 }
 0x103   : > { %v2797_v29 = vmul.f32 0.15625, %v574_v28  ;;  %v623_v30 = vpop.f32.mrf.mxu1  ;;  %3787 = vst [vmem:[#allocation43_spill] sm:$0xff] %v2821_v48 }
 0x104   : > { %v2799_v31 = vmul.f32 0.15625, %v623_v30  ;;  %3788 = vst [vmem:[#allocation44_spill] sm:$0xff] %v2823_v49  ;;  %v718_v60 = vmax.f32 %v2821_v48, %v2823_v49 }
 0x105   : > { %3782 = vst [vmem:[#allocation38_spill] sm:$0xff] %v2797_v29  ;;  %v1229_v51 = vmax.f32 %v1227_v45, %v2797_v29 }
 0x106   : > { %3783 = vst [vmem:[#allocation39_spill] sm:$0xff] %v2799_v31  ;;  %v697_v33 = vmax.f32 %v2797_v29, %v2799_v31  ;;  %v1250_v54 = vmax.f32 %v1248_v47, %v2799_v31 }
 0x108   : > { %695 = vmax.xlane.f32.xlu1 %v694_v32  ;;  %698 = vmax.xlane.f32.xlu2 %v697_v33  ;;  %v594_v34 = vpop.f32.mrf.mxu2 }
 0x109   : > { %v2805_v35 = vmul.f32 0.15625, %v594_v34  ;;  %v643_v36 = vpop.f32.mrf.mxu3 }
 0x10a   : > { %v2807_v37 = vmul.f32 0.15625, %v643_v36  ;;  %v576_v38 = vpop.f32.mrf.mxu0 }
 0x10b   : > { %3784 = vst [vmem:[#allocation40_spill] sm:$0xff] %v2805_v35  ;;  %v2809_v39 = vmul.f32 0.15625, %v576_v38  ;;  %v625_v40 = vpop.f32.mrf.mxu1 }
 0x10c   : > { %3785 = vst [vmem:[#allocation41_spill] sm:$0xff] %v2807_v37  ;;  %v2811_v41 = vmul.f32 0.15625, %v625_v40  ;;  %v721_v42 = vmax.f32 %v2805_v35, %v2807_v37 }
 0x10d   : > { %3786 = vst [vmem:[#allocation42_spill] sm:$0xff] %v2809_v39  ;;  %v1230_v15 = vmax.f32 %v1228_v1, %v2809_v39 }
 0x10e   : > { %722 = vmax.xlane.f32.xlu0 %v721_v42  ;;  %v700_v43 = vmax.f32 %v2809_v39, %v2811_v41  ;;  %v1251_v19 = vmax.f32 %v1249_v7, %v2811_v41 }
 0x110   : > { %701 = vmax.xlane.f32.xlu2 %v700_v43  ;;  %v596_v44 = vpop.f32.mrf.mxu2 }
 0x111   : > { %v645_v46 = vpop.f32.mrf.mxu3  ;;  %v2863_v36 = vmul.f32 0.15625, %v596_v44 }
 0x112   : > { %v579_v50 = vpop.f32.mrf.mxu0  ;;  %v2869_v45 = vmul.f32 0.15625, %v645_v46 }
 0x113   : > { %v2826_v52 = vmul.f32 0.15625, %v579_v50  ;;  %v628_v53 = vpop.f32.mrf.mxu1 }
 0x114   : > { %v2829_v55 = vmul.f32 0.15625, %v628_v53 }
 0x115   : > { %3789 = vst [vmem:[#allocation45_spill] sm:$0xff] %v2826_v52  ;;  %v1231_v56 = vmax.f32 %v1229_v51, %v2826_v52 }
 0x116   : > { %v1252_v58 = vmax.f32 %v1250_v54, %v2829_v55  ;;  %v703_v61 = vmax.f32 %v2826_v52, %v2829_v55 }
 0x117   : > { %v1233_v3 = vmax.f32 %v1231_v56, %v2763_v62 }
 0x118   : > { %719 = vmax.xlane.f32.xlu2 %v718_v60  ;;  %704 = vmax.xlane.f32.xlu0 %v703_v61  ;;  %v599_v63 = vpop.f32.mrf.mxu2  ;;  %v1254_v8 = vmax.f32 %v1252_v58, %v2765_v0  ;;  %v724_v61 = vmax.f32 %v2863_v36, %v2869_v45 }
 0x119   : > { %v2840_v5 = vmul.f32 0.15625, %v599_v63  ;;  %v648_v6 = vpop.f32.mrf.mxu3  ;;  %v1235_v23 = vmax.f32 %v1233_v3, %v2787_v18 }
 0x11a   : > { %v2845_v11 = vmul.f32 0.15625, %v648_v6  ;;  %v581_v13 = vpop.f32.mrf.mxu0  ;;  %v1256_v25 = vmax.f32 %v1254_v8, %v2789_v20 }
 0x11b   : > { %v2848_v16 = vmul.f32 0.15625, %v581_v13  ;;  %v630_v17 = vpop.f32.mrf.mxu1  ;;  %v1237_v38 = vmax.f32 %v1235_v23, %v2805_v35 }
 0x11c   : > { %v2851_v21 = vmul.f32 0.15625, %v630_v17  ;;  %v727_v22 = vmax.f32 %v2840_v5, %v2845_v11  ;;  %v1258_v47 = vmax.f32 %v1256_v25, %v2807_v37 }
 0x11d   : > { %v1232_v24 = vmax.f32 %v1230_v15, %v2848_v16  ;;  %v1239_v56 = vmax.f32 %v1237_v38, %v2840_v5 }
 0x11e   : > { %v1253_v28 = vmax.f32 %v1251_v19, %v2851_v21  ;;  %v706_v30 = vmax.f32 %v2848_v16, %v2851_v21  ;;  %v1260_v46 = vmax.f32 %v1258_v47, %v2845_v11 }
 0x11f   : > { %v1234_v32 = vmax.f32 %v1232_v24, %v2775_v9 }
 0x120   : > { %v1255_v33 = vmax.f32 %v1253_v28, %v2777_v10  ;;  %728 = vmax.xlane.f32.xlu2 %v727_v22  ;;  %707 = vmax.xlane.f32.xlu1 %v706_v30  ;;  %v601_v34 = vpop.f32.mrf.mxu2 }
 0x121   : > { %v2866_v40 = vmul.f32 0.15625, %v601_v34  ;;  %v1236_v42 = vmax.f32 %v1234_v32, %v2821_v48  ;;  %v650_v43 = vpop.f32.mrf.mxu3 }
 0x122   : > { %v2872_v50 = vmul.f32 0.15625, %v650_v43  ;;  %v1257_v51 = vmax.f32 %v1255_v33, %v2823_v49 }
 0x123   : > { %3790 = vst [vmem:[#allocation46_spill] sm:$0xff] %v2866_v40  ;;  %v1238_v53 = vmax.f32 %v1236_v42, %v2863_v36 }
 0x124   : > { %3791 = vst [vmem:[#allocation47_spill] sm:$0xff] %v2872_v50  ;;  %v1259_v44 = vmax.f32 %v1257_v51, %v2869_v45  ;;  %v730_v54 = vmax.f32 %v2866_v40, %v2872_v50 }
 0x125   : > { %v1240_v58 = vmax.f32 %v1238_v53, %v2866_v40 }
 0x126   : > { %v1261_v60 = vmax.f32 %v1259_v44, %v2872_v50  ;;  %731 = vmax.xlane.f32.xlu0 %v730_v54 }
 0x127   : > { %v1241_v63 = vmax.f32 %v1239_v56, %v1240_v58 }
 0x128   : > { %v1262_v1 = vmax.f32 %v1260_v46, %v1261_v60  ;;  %725 = vmax.xlane.f32.xlu1 %v724_v61 }
 0x129   : > { %v1242_v3 = vrot.slane %v1241_v63, 4 }
 0x12a   : > { %v1263_v6 = vrot.slane %v1262_v1, 4 }
 0x12b   : > { %v1243_v7 = vmax.f32 %v1241_v63, %v1242_v3 }
 0x12c   : > { %v1264_v8 = vmax.f32 %v1262_v1, %v1263_v6 }
 0x12d   : > { %v1244_v13 = vrot.slane %v1243_v7, 2 }
 0x12e   : > { %v1265_v15 = vrot.slane %v1264_v8, 2 }
 0x12f   : > { %v1245_v17 = vmax.f32 %v1243_v7, %v1244_v13 }
 0x130   : > { %v1266_v19 = vmax.f32 %v1264_v8, %v1265_v15 }
 0x131   : > { %v1246_v22 = vrot.slane %v1245_v17, 1 }
 0x132   : > { %v1267_v23 = vrot.slane %v1266_v19, 1 }
 0x133   : > { %v2885_v24 = vmax.f32 %v1245_v17, %v1246_v22 }
 0x134   : > { %v2887_v25 = vmax.f32 %v1266_v19, %v1267_v23 }
 0x135   : > { %3792 = vst [vmem:[#allocation48_spill] sm:$0xff] %v2885_v24 }
 0x136   : > { %3793 = vst [vmem:[#allocation49_spill] sm:$0xff] %v2887_v25 }
 0x15b   : > { %v2902_v28 = vpop.xlane.xlu0 %686 }
 0x15c   : > { %v733_v30 = vsub.f32 %v2757_v57, %v2902_v28  ;;  %v734_v32 = vsub.f32 %v2759_v59, %v2902_v28  ;;  %878 = vst.msk [vmem:[%s2900_s24] sm:$0xff] %vm877_vm0, %v2902_v28 }
 0x15e   : > { %v765_v33 = vmul.f32 1.442695, %v733_v30  ;;  %v767_v34 = vmul.f32 1.442695, %v734_v32 }
 0x160   : > { %2090 = vpow2.f32 %v765_v33 }
 0x161   : > { %2092 = vpow2.f32 %v767_v34  ;;  %v2911_v38 = vpop.xlane.xlu2 %710 }
 0x162   : > { %v749_v42 = vsub.f32 %v2763_v62, %v2911_v38  ;;  %v750_v43 = vsub.f32 %v2765_v0, %v2911_v38  ;;  %886 = vst.msk [vmem:[%s2900_s24 + $0x40] sm:$0xff] %vm877_vm0, %v2911_v38 }
 0x163   : > { %v2920_v47 = vpop.xlane.xlu0 %689 }
 0x164   : > { %v797_v51 = vmul.f32 1.442695, %v749_v42  ;;  %v799_v53 = vmul.f32 1.442695, %v750_v43  ;;  %v735_v44 = vsub.f32 %v2767_v2, %v2920_v47  ;;  %v736_v54 = vsub.f32 %v2769_v4, %v2920_v47  ;;  %879 = vst.msk [vmem:[%s2900_s24 + $0x8] sm:$0xff] %vm877_vm0, %v2920_v47 }
 0x166   : > { %v2091_v56 = vpop.eup %2090  ;;  %2094 = vpow2.f32 %v797_v51  ;;  %v769_v58 = vmul.f32 1.442695, %v735_v44  ;;  %v771_v46 = vmul.f32 1.442695, %v736_v54 }
 0x167   : > { %v2093_v60 = vpop.eup %2092  ;;  %2096 = vpow2.f32 %v799_v53 }
 0x168   : > { %2098 = vpow2.f32 %v769_v58  ;;  %v829_v61 = vadd.f32 %v2093_v60, %v2091_v56 }
 0x169   : > { %2100 = vpow2.f32 %v771_v46 }
 0x16a   : > { %830 = vadd.xlane.f32.xlu1 %v829_v61 }
 0x16b   : > { %v2929_v63 = vpop.xlane.xlu0 %713  ;;  %v2931_v1 = vpop.xlane.xlu1 %692 }
 0x16c   : > { %v2095_v3 = vpop.eup %2094  ;;  %v751_v6 = vsub.f32 %v2775_v9, %v2929_v63  ;;  %v752_v7 = vsub.f32 %v2777_v10, %v2929_v63  ;;  %887 = vst.msk [vmem:[%s2900_s24 + $0x48] sm:$0xff] %vm877_vm0, %v2929_v63  ;;  %v737_v8 = vsub.f32 %v2779_v12, %v2931_v1  ;;  %v738_v13 = vsub.f32 %v2781_v14, %v2931_v1 }
 0x16d   : > { %v2097_v15 = vpop.eup %2096  ;;  %880 = vst.msk [vmem:[%s2900_s24 + $0x10] sm:$0xff] %vm877_vm0, %v2931_v1 }
 0x16e   : > { %v2099_v17 = vpop.eup %2098  ;;  %v801_v19 = vmul.f32 1.442695, %v751_v6  ;;  %v803_v22 = vmul.f32 1.442695, %v752_v7  ;;  %v773_v23 = vmul.f32 1.442695, %v737_v8  ;;  %v853_v30 = vadd.f32 %v2097_v15, %v2095_v3 }
 0x16f   : > { %v2101_v32 = vpop.eup %2100  ;;  %v775_v33 = vmul.f32 1.442695, %v738_v13 }
 0x170   : > { %2102 = vpow2.f32 %v801_v19  ;;  %854 = vadd.xlane.f32.xlu0 %v853_v30  ;;  %v832_v34 = vadd.f32 %v2101_v32, %v2099_v17 }
 0x171   : > { %2104 = vpow2.f32 %v803_v22 }
 0x172   : > { %2106 = vpow2.f32 %v773_v23  ;;  %833 = vadd.xlane.f32.xlu2 %v832_v34 }
 0x173   : > { %2108 = vpow2.f32 %v775_v33  ;;  %v2947_v42 = vpop.xlane.xlu1 %716 }
 0x174   : > { %v753_v43 = vsub.f32 %v2787_v18, %v2947_v42  ;;  %v754_v51 = vsub.f32 %v2789_v20, %v2947_v42  ;;  %888 = vst.msk [vmem:[%s2900_s24 + $0x50] sm:$0xff] %vm877_vm0, %v2947_v42 }
 0x176   : > { %v2103_v53 = vpop.eup %2102  ;;  %v805_v44 = vmul.f32 1.442695, %v753_v43  ;;  %v807_v54 = vmul.f32 1.442695, %v754_v51 }
 0x177   : > { %v2105_v56 = vpop.eup %2104 }
 0x178   : > { %v2107_v58 = vpop.eup %2106  ;;  %2110 = vpow2.f32 %v805_v44  ;;  %v856_v46 = vadd.f32 %v2105_v56, %v2103_v53 }
 0x179   : > { %v2109_v60 = vpop.eup %2108  ;;  %2112 = vpow2.f32 %v807_v54 }
 0x17a   : > { %v835_v61 = vadd.f32 %v2109_v60, %v2107_v58  ;;  %857 = vadd.xlane.f32.xlu1 %v856_v46 }
 0x17b   : > { %v2956_v3 = vpop.xlane.xlu1 %695  ;;  %v2958_v6 = vpop.xlane.xlu2 %698 }
 0x17c   : > { %836 = vadd.xlane.f32.xlu0 %v835_v61  ;;  %v739_v7 = vsub.f32 %v2793_v26, %v2956_v3  ;;  %v740_v8 = vsub.f32 %v2795_v27, %v2956_v3  ;;  %881 = vst.msk [vmem:[%s2900_s24 + $0x18] sm:$0xff] %vm877_vm0, %v2956_v3  ;;  %v741_v13 = vsub.f32 %v2797_v29, %v2958_v6 }
 0x17d   : > { %v742_v15 = vsub.f32 %v2799_v31, %v2958_v6  ;;  %882 = vst.msk [vmem:[%s2900_s24 + $0x20] sm:$0xff] %vm877_vm0, %v2958_v6 }
 0x17e   : > { %v2111_v17 = vpop.eup %2110  ;;  %v777_v19 = vmul.f32 1.442695, %v739_v7  ;;  %v779_v22 = vmul.f32 1.442695, %v740_v8  ;;  %v781_v23 = vmul.f32 1.442695, %v741_v13 }
 0x17f   : > { %v2113_v30 = vpop.eup %2112  ;;  %v783_v32 = vmul.f32 1.442695, %v742_v15 }
 0x180   : > { %2114 = vpow2.f32 %v777_v19  ;;  %v859_v33 = vadd.f32 %v2113_v30, %v2111_v17 }
 0x181   : > { %2116 = vpow2.f32 %v779_v22  ;;  %v2974_v34 = vpop.xlane.xlu0 %722 }
 0x182   : > { %2118 = vpow2.f32 %v781_v23  ;;  %v757_v43 = vsub.f32 %v2805_v35, %v2974_v34  ;;  %v758_v51 = vsub.f32 %v2807_v37, %v2974_v34  ;;  %890 = vst.msk [vmem:[%s2900_s24 + $0x60] sm:$0xff] %vm877_vm0, %v2974_v34  ;;  %860 = vadd.xlane.f32.xlu2 %v859_v33 }
 0x183   : > { %2120 = vpow2.f32 %v783_v32  ;;  %v2983_v53 = vpop.xlane.xlu2 %701 }
 0x184   : > { %v813_v44 = vmul.f32 1.442695, %v757_v43  ;;  %v815_v54 = vmul.f32 1.442695, %v758_v51  ;;  %v743_v56 = vsub.f32 %v2809_v39, %v2983_v53  ;;  %v744_v58 = vsub.f32 %v2811_v41, %v2983_v53  ;;  %883 = vst.msk [vmem:[%s2900_s24 + $0x28] sm:$0xff] %vm877_vm0, %v2983_v53 }
 0x186   : > { %v2115_v46 = vpop.eup %2114  ;;  %2122 = vpow2.f32 %v813_v44  ;;  %v785_v60 = vmul.f32 1.442695, %v743_v56  ;;  %v787_v61 = vmul.f32 1.442695, %v744_v58 }
 0x187   : > { %v2117_v7 = vpop.eup %2116  ;;  %2124 = vpow2.f32 %v815_v54 }
 0x188   : > { %v2119_v8 = vpop.eup %2118  ;;  %2126 = vpow2.f32 %v785_v60  ;;  %v838_v13 = vadd.f32 %v2117_v7, %v2115_v46 }
 0x189   : > { %v2121_v15 = vpop.eup %2120  ;;  %2128 = vpow2.f32 %v787_v61 }
 0x18a   : > { %v841_v17 = vadd.f32 %v2121_v15, %v2119_v8  ;;  %839 = vadd.xlane.f32.xlu1 %v838_v13 }
 0x18b   : > { %v2992_v19 = vpop.xlane.xlu2 %719  ;;  %v2994_v22 = vpop.xlane.xlu0 %704 }
 0x18c   : > { %v2123_v23 = vpop.eup %2122  ;;  %842 = vadd.xlane.f32.xlu2 %v841_v17  ;;  %v755_v30 = vsub.f32 %v2821_v48, %v2992_v19  ;;  %v756_v32 = vsub.f32 %v2823_v49, %v2992_v19  ;;  %889 = vst.msk [vmem:[%s2900_s24 + $0x58] sm:$0xff] %vm877_vm0, %v2992_v19  ;;  %v745_v33 = vsub.f32 %v2826_v52, %v2994_v22 }
 0x18d   : > { %v2125_v43 = vpop.eup %2124  ;;  %v746_v51 = vsub.f32 %v2829_v55, %v2994_v22  ;;  %884 = vst.msk [vmem:[%s2900_s24 + $0x30] sm:$0xff] %vm877_vm0, %v2994_v22 }
 0x18e   : > { %v2127_v44 = vpop.eup %2126  ;;  %v809_v54 = vmul.f32 1.442695, %v755_v30  ;;  %v811_v56 = vmul.f32 1.442695, %v756_v32  ;;  %v789_v58 = vmul.f32 1.442695, %v745_v33  ;;  %v865_v7 = vadd.f32 %v2125_v43, %v2123_v23 }
 0x18f   : > { %v2129_v46 = vpop.eup %2128  ;;  %v791_v60 = vmul.f32 1.442695, %v746_v51 }
 0x190   : > { %2130 = vpow2.f32 %v809_v54  ;;  %v844_v61 = vadd.f32 %v2129_v46, %v2127_v44 }
 0x191   : > { %2132 = vpow2.f32 %v811_v56 }
 0x192   : > { %2134 = vpow2.f32 %v789_v58  ;;  %845 = vadd.xlane.f32.xlu0 %v844_v61  ;;  %866 = vadd.xlane.f32.xlu1 %v865_v7 }
 0x193   : > { %2136 = vpow2.f32 %v791_v60  ;;  %v3010_v8 = vpop.xlane.xlu2 %728  ;;  %v3012_v13 = vpop.xlane.xlu1 %707 }
 0x194   : > { %v761_v15 = vsub.f32 %v2840_v5, %v3010_v8  ;;  %v762_v17 = vsub.f32 %v2845_v11, %v3010_v8  ;;  %892 = vst.msk [vmem:[%s2900_s24 + $0x70] sm:$0xff] %vm877_vm0, %v3010_v8  ;;  %v747_v23 = vsub.f32 %v2848_v16, %v3012_v13  ;;  %v748_v30 = vsub.f32 %v2851_v21, %v3012_v13 }
 0x195   : > { %885 = vst.msk [vmem:[%s2900_s24 + $0x38] sm:$0xff] %vm877_vm0, %v3012_v13 }
 0x196   : > { %v2131_v32 = vpop.eup %2130  ;;  %v821_v33 = vmul.f32 1.442695, %v761_v15  ;;  %v823_v43 = vmul.f32 1.442695, %v762_v17  ;;  %v793_v51 = vmul.f32 1.442695, %v747_v23 }
 0x197   : > { %v2133_v44 = vpop.eup %2132  ;;  %v795_v54 = vmul.f32 1.442695, %v748_v30 }
 0x198   : > { %v2135_v56 = vpop.eup %2134  ;;  %2138 = vpow2.f32 %v821_v33  ;;  %v862_v58 = vadd.f32 %v2133_v44, %v2131_v32 }
 0x199   : > { %v2137_v46 = vpop.eup %2136  ;;  %2140 = vpow2.f32 %v823_v43  ;;  %v3028_v60 = vpop.xlane.xlu0 %731 }
 0x19a   : > { %3794 = vst [vmem:[#allocation50_spill] sm:$0xff] %v3028_v60  ;;  %2142 = vpow2.f32 %v793_v51  ;;  %863 = vadd.xlane.f32.xlu0 %v862_v58  ;;  %v763_v61 = vsub.f32 %v2866_v40, %v3028_v60  ;;  %v764_v7 = vsub.f32 %v2872_v50, %v3028_v60  ;;  %v847_v15 = vadd.f32 %v2137_v46, %v2135_v56 }
 0x19b   : > { %893 = vst.msk [vmem:[%s2900_s24 + $0x78] sm:$0xff] %vm877_vm0, %v3028_v60  ;;  %2144 = vpow2.f32 %v795_v54  ;;  %v3037_v17 = vpop.xlane.xlu1 %725 }
 0x19c   : > { %3795 = vst [vmem:[#allocation51_spill] sm:$0xff] %v3037_v17  ;;  %v825_v23 = vmul.f32 1.442695, %v763_v61  ;;  %v827_v30 = vmul.f32 1.442695, %v764_v7  ;;  %848 = vadd.xlane.f32.xlu1 %v847_v15  ;;  %v759_v32 = vsub.f32 %v2863_v36, %v3037_v17  ;;  %v760_v33 = vsub.f32 %v2869_v45, %v3037_v17 }
 0x19d   : > { %891 = vst.msk [vmem:[%s2900_s24 + $0x68] sm:$0xff] %vm877_vm0, %v3037_v17 }
 0x19e   : > { %v2139_v43 = vpop.eup %2138  ;;  %2146 = vpow2.f32 %v825_v23  ;;  %v817_v51 = vmul.f32 1.442695, %v759_v32  ;;  %v819_v44 = vmul.f32 1.442695, %v760_v33 }
 0x19f   : > { %v2141_v56 = vpop.eup %2140  ;;  %2148 = vpow2.f32 %v827_v30 }
 0x1a0   : > { %v2143_v54 = vpop.eup %2142  ;;  %2150 = vpow2.f32 %v817_v51  ;;  %v871_v58 = vadd.f32 %v2141_v56, %v2139_v43 }
 0x1a1   : > { %v2145_v46 = vpop.eup %2144  ;;  %2152 = vpow2.f32 %v819_v44 }
 0x1a2   : > { %872 = vadd.xlane.f32.xlu0 %v871_v58  ;;  %v850_v61 = vadd.f32 %v2145_v46, %v2143_v54 }
 0x1a4   : > { %v2147_v7 = vpop.eup %2146  ;;  %851 = vadd.xlane.f32.xlu2 %v850_v61  ;;  %v910_v61 = vmul.f32 2.0, %v2757_v57  ;;  %v3088_v57 = vmul.f32 2.0, %v2775_v9  ;;  %v3101_v9 = vmul.f32 2.0, %v2789_v20  ;;  %v3116_v20 = vmul.f32 2.0, %v2823_v49 }
 0x1a5   : > { %v2149_v15 = vpop.eup %2148  ;;  %v3129_v49 = vmul.f32 2.0, %v2809_v39 }
 0x1a6   : > { %v2151_v24 = vpop.eup %2150  ;;  %v874_v25 = vadd.f32 %v2149_v15, %v2147_v7  ;;  %v911_v7 = vmul.f32 2.0, %v2759_v59  ;;  %v3076_v15 = vmul.f32 2.0, %v2763_v62 }
 0x1a7   : > { %v2153_v17 = vpop.eup %2152 }
 0x1a8   : > { %875 = vadd.xlane.f32.xlu1 %v874_v25  ;;  %v868_v23 = vadd.f32 %v2153_v17, %v2151_v24 }
 0x1ac   : > { %869 = vadd.xlane.f32.xlu2 %v868_v23  ;;  %v3079_v23 = vmul.f32 2.0, %v2765_v0  ;;  %v914_v0 = vmul.f32 2.0, %v2779_v12 }
 0x1dd   : > { %v831_v30 = vpop.xlane.xlu1 %830 }
 0x1de   : > { %894 = vst.msk [vmem:[%s3051_s9] sm:$0xff] %vm877_vm0, %v831_v30 }
 0x1e3   : > { %v855_v25 = vpop.xlane.xlu0 %854 }
 0x1e4   : > { %902 = vst.msk [vmem:[%s3051_s9 + $0x40] sm:$0xff] %vm877_vm0, %v855_v25 }
 0x1e5   : > { %v834_v24 = vpop.xlane.xlu2 %833 }
 0x1e6   : > { %895 = vst.msk [vmem:[%s3051_s9 + $0x8] sm:$0xff] %vm877_vm0, %v834_v24 }
 0x1ed   : > { %v858_v17 = vpop.xlane.xlu1 %857 }
 0x1ee   : > { %903 = vst.msk [vmem:[%s3051_s9 + $0x48] sm:$0xff] %vm877_vm0, %v858_v17 }
 0x1ef   : > { %v837_v32 = vpop.xlane.xlu0 %836 }
 0x1f0   : > { %896 = vst.msk [vmem:[%s3051_s9 + $0x10] sm:$0xff] %vm877_vm0, %v837_v32  ;;  %2154 = vlog2.f32 %v837_v32 }
 0x1f1   : > { %2156 = vlog2.f32 %v831_v30  ;;  %v3082_v30 = vmul.f32 2.0, %v2767_v2 }
 0x1f5   : > { %v861_v33 = vpop.xlane.xlu2 %860 }
 0x1f6   : > { %904 = vst.msk [vmem:[%s3051_s9 + $0x50] sm:$0xff] %vm877_vm0, %v861_v33  ;;  %v2155_v54 = vpop.eup %2154 }
 0x1f7   : > { %v2157_v58 = vpop.eup %2156  ;;  %v947_v32 = vmul.f32 0.6931472, %v2155_v54 }
 0x1f8   : > { %v943_v59 = vmul.f32 0.6931472, %v2157_v58  ;;  %v3106_v58 = vmul.f32 2.0, %v2793_v26  ;;  %v919_v26 = vmul.f32 2.0, %v2799_v31 }
 0x1fd   : > { %v840_v43 = vpop.xlane.xlu1 %839 }
 0x1fe   : > { %897 = vst.msk [vmem:[%s3051_s9 + $0x18] sm:$0xff] %vm877_vm0, %v840_v43 }
 0x1ff   : > { %v843_v51 = vpop.xlane.xlu2 %842 }
 0x200   : > { %898 = vst.msk [vmem:[%s3051_s9 + $0x20] sm:$0xff] %vm877_vm0, %v843_v51  ;;  %2158 = vlog2.f32 %v843_v51 }
 0x201   : > { %2160 = vlog2.f32 %v855_v25  ;;  %v3085_v25 = vmul.f32 2.0, %v2769_v4  ;;  %v3098_v4 = vmul.f32 2.0, %v2787_v18  ;;  %v3113_v18 = vmul.f32 2.0, %v2821_v48 }
 0x202   : > { %2162 = vlog2.f32 %v834_v24  ;;  %v3093_v24 = vmul.f32 2.0, %v2777_v10  ;;  %v3109_v10 = vmul.f32 2.0, %v2795_v27  ;;  %v3122_v27 = vmul.f32 2.0, %v2805_v35 }
 0x203   : > { %2164 = vlog2.f32 %v840_v43  ;;  %v915_v43 = vmul.f32 2.0, %v2781_v14  ;;  %v918_v14 = vmul.f32 2.0, %v2797_v29  ;;  %v3132_v48 = vmul.f32 2.0, %v2811_v41 }
 0x204   : > { %2166 = vlog2.f32 %v858_v17 }
 0x205   : > { %v846_v44 = vpop.xlane.xlu0 %845  ;;  %v867_v56 = vpop.xlane.xlu1 %866 }
 0x206   : > { %899 = vst.msk [vmem:[%s3051_s9 + $0x28] sm:$0xff] %vm877_vm0, %v846_v44  ;;  %v2159_v46 = vpop.eup %2158  ;;  %2168 = vlog2.f32 %v846_v44  ;;  %v976_v44 = vadd.f32 %v947_v32, %v2931_v1  ;;  %v3125_v1 = vmul.f32 2.0, %v2807_v37 }
 0x207   : > { %906 = vst.msk [vmem:[%s3051_s9 + $0x60] sm:$0xff] %vm877_vm0, %v867_v56  ;;  %v951_v62 = vmul.f32 0.6931472, %v2159_v46  ;;  %v2161_v17 = vpop.eup %2160 }
 0x208   : > { %v2163_v46 = vpop.eup %2162  ;;  %v3135_v35 = vsub.f32 %v914_v0, %v976_v44  ;;  %v3137_v2 = vsub.f32 %v915_v43, %v976_v44 }
 0x209   : > { %v2165_v12 = vpop.eup %2164  ;;  %v945_v29 = vmul.f32 0.6931472, %v2163_v46 }
 0x20a   : > { %v2167_v32 = vpop.eup %2166  ;;  %v949_v60 = vmul.f32 0.6931472, %v2165_v12 }
 0x20b   : > { %v975_v12 = vadd.f32 %v945_v29, %v2920_v47 }
 0x20c   : > { %v2169_v31 = vpop.eup %2168 }
 0x20d   : > { %v864_v51 = vpop.xlane.xlu0 %863 }
 0x20e   : > { %905 = vst.msk [vmem:[%s3051_s9 + $0x58] sm:$0xff] %vm877_vm0, %v864_v51 }
 0x20f   : > { %v849_v54 = vpop.xlane.xlu1 %848 }
 0x210   : > { %900 = vst.msk [vmem:[%s3051_s9 + $0x30] sm:$0xff] %vm877_vm0, %v849_v54  ;;  %2170 = vlog2.f32 %v849_v54  ;;  %v974_v54 = vadd.f32 %v943_v59, %v2902_v28  ;;  %v922_v59 = vmul.f32 2.0, %v2826_v52  ;;  %v959_v28 = vmul.f32 0.6931472, %v2161_v17 }
 0x211   : > { %2172 = vlog2.f32 %v861_v33  ;;  %v978_v33 = vadd.f32 %v951_v62, %v2958_v6 }
 0x212   : > { %2174 = vlog2.f32 %v867_v56  ;;  %v3139_v6 = vsub.f32 %v910_v61, %v974_v54  ;;  %v3141_v39 = vsub.f32 %v911_v7, %v974_v54  ;;  %v923_v56 = vmul.f32 2.0, %v2829_v55 }
 0x213   : > { %2176 = vlog2.f32 %v864_v51  ;;  %v3145_v17 = vsub.f32 %v918_v14, %v978_v33  ;;  %v3147_v46 = vsub.f32 %v919_v26, %v978_v33  ;;  %v982_v44 = vadd.f32 %v959_v28, %v2911_v38 }
 0x214   : > { %v953_v61 = vmul.f32 0.6931472, %v2169_v31  ;;  %v1022_v7 = vmax.f32 %v3139_v6, %v3135_v35  ;;  %v1043_v14 = vmax.f32 %v3141_v39, %v3137_v2  ;;  %v977_v54 = vadd.f32 %v949_v60, %v2956_v3 }
 0x215   : > { %v873_v37 = vpop.xlane.xlu0 %872  ;;  %v3161_v31 = vmul.f32 2.0, %v2863_v36  ;;  %v3176_v3 = vmul.f32 2.0, %v2869_v45 }
 0x216   : > { %v2171_v62 = vpop.eup %2170  ;;  %908 = vst.msk [vmem:[%s3051_s9 + $0x70] sm:$0xff] %vm877_vm0, %v873_v37  ;;  %2178 = vlog2.f32 %v873_v37  ;;  %v961_v37 = vmul.f32 0.6931472, %v2167_v32  ;;  %v1024_v33 = vmax.f32 %v1022_v7, %v3145_v17  ;;  %v1045_v29 = vmax.f32 %v1043_v14, %v3147_v46 }
 0x217   : > { %v2173_v52 = vpop.eup %2172  ;;  %v955_v0 = vmul.f32 0.6931472, %v2171_v62  ;;  %v852_v43 = vpop.xlane.xlu2 %851  ;;  %v3179_v32 = vsub.f32 %v3079_v23, %v982_v44  ;;  %v3189_v7 = vsub.f32 %v3106_v58, %v977_v54  ;;  %v3192_v14 = vsub.f32 %v3109_v10, %v977_v54 }
 0x218   : > { %901 = vst.msk [vmem:[%s3051_s9 + $0x38] sm:$0xff] %vm877_vm0, %v852_v43  ;;  %2180 = vlog2.f32 %v852_v43  ;;  %v963_v51 = vmul.f32 0.6931472, %v2173_v52  ;;  %v2175_v38 = vpop.eup %2174  ;;  %v979_v52 = vadd.f32 %v953_v61, %v2983_v53  ;;  %v983_v53 = vadd.f32 %v961_v37, %v2929_v63 }
 0x219   : > { %v980_v26 = vadd.f32 %v955_v0, %v2994_v22  ;;  %v2177_v43 = vpop.eup %2176  ;;  %v3170_v22 = vsub.f32 %v3076_v15, %v982_v44  ;;  %v967_v23 = vmul.f32 0.6931472, %v2175_v38  ;;  %v924_v10 = vmul.f32 2.0, %v2848_v16 }
 0x21a   : > { %v984_v61 = vadd.f32 %v963_v51, %v2947_v42  ;;  %v3200_v63 = vsub.f32 %v3129_v49, %v979_v52  ;;  %v3203_v42 = vsub.f32 %v3132_v48, %v979_v52  ;;  %v965_v58 = vmul.f32 0.6931472, %v2177_v43 }
 0x21b   : > { %v3165_v47 = vsub.f32 %v922_v59, %v980_v26  ;;  %v3167_v28 = vsub.f32 %v923_v56, %v980_v26  ;;  %v876_v62 = vpop.xlane.xlu1 %875  ;;  %v3182_v59 = vsub.f32 %v3082_v30, %v975_v12  ;;  %v938_v37 = vmul.f32 2.0, %v2840_v5 }
 0x21c   : > { %909 = vst.msk [vmem:[%s3051_s9 + $0x78] sm:$0xff] %vm877_vm0, %v876_v62  ;;  %2182 = vlog2.f32 %v876_v62  ;;  %v2179_v60 = vpop.eup %2178  ;;  %v925_v38 = vmul.f32 2.0, %v2851_v21  ;;  %v3219_v62 = vsub.f32 %v3098_v4, %v984_v61  ;;  %v3222_v43 = vsub.f32 %v3101_v9, %v984_v61 }
 0x21d   : > { %v1026_v0 = vmax.f32 %v1024_v33, %v3165_v47  ;;  %v1047_v15 = vmax.f32 %v1045_v29, %v3167_v28  ;;  %v3197_v29 = vsub.f32 %v3085_v25, %v975_v12  ;;  %v971_v51 = vmul.f32 0.6931472, %v2179_v60 }
 0x21e   : > { %v2181_v56 = vpop.eup %2180  ;;  %v1023_v25 = vmax.f32 %v3182_v59, %v3189_v7  ;;  %v3216_v12 = vsub.f32 %v3088_v57, %v983_v53  ;;  %v986_v52 = vadd.f32 %v967_v23, %v2974_v34  ;;  %v985_v57 = vadd.f32 %v965_v58, %v2992_v19 }
 0x21f   : > { %v1028_v30 = vmax.f32 %v1026_v0, %v3170_v22  ;;  %v1049_v44 = vmax.f32 %v1047_v15, %v3179_v32  ;;  %v957_v26 = vmul.f32 0.6931472, %v2181_v56  ;;  %v870_v33 = vpop.xlane.xlu2 %869  ;;  %v1044_v49 = vmax.f32 %v3197_v29, %v3192_v14 }
 0x220   : > { %907 = vst.msk [vmem:[%s3051_s9 + $0x68] sm:$0xff] %vm877_vm0, %v870_v33  ;;  %2184 = vlog2.f32 %v870_v33  ;;  %v1025_v60 = vmax.f32 %v1023_v25, %v3200_v63  ;;  %v988_v4 = vadd.f32 %v971_v51, %v3010_v8  ;;  %v3244_v19 = vsub.f32 %v3122_v27, %v986_v52 }
 0x221   : > { %v981_v48 = vadd.f32 %v957_v26, %v3012_v13  ;;  %v1046_v0 = vmax.f32 %v1044_v49, %v3203_v42  ;;  %v3232_v13 = vsub.f32 %v3093_v24, %v983_v53  ;;  %v1030_v61 = vmax.f32 %v1028_v30, %v3219_v62  ;;  %v3797_v49 = vld [vmem:[#allocation51_spill] sm:$0xff] }
 0x222   : > { %v2183_v54 = vpop.eup %2182  ;;  %v1051_v34 = vmax.f32 %v1049_v44, %v3222_v43  ;;  %v939_v24 = vmul.f32 2.0, %v2845_v11  ;;  %v3247_v8 = vsub.f32 %v3125_v1, %v986_v52  ;;  %v3252_v58 = vsub.f32 %v3113_v18, %v985_v57 }
 0x223   : > { %v3227_v15 = vsub.f32 %v924_v10, %v981_v48  ;;  %v3229_v56 = vsub.f32 %v925_v38, %v981_v48  ;;  %v973_v26 = vmul.f32 0.6931472, %v2183_v54  ;;  %v940_v10 = vmul.f32 2.0, %v2866_v40  ;;  %v3796_v54 = vld [vmem:[#allocation50_spill] sm:$0xff] }
 0x224   : > { %v941_v38 = vmul.f32 2.0, %v2872_v50  ;;  %v3255_v51 = vsub.f32 %v3116_v20, %v985_v57  ;;  %v3261_v27 = vsub.f32 %v939_v24, %v988_v4  ;;  %v1032_v1 = vmax.f32 %v1030_v61, %v3244_v19 }
 0x225   : > { %v1027_v23 = vmax.f32 %v1025_v60, %v3227_v15  ;;  %v1048_v33 = vmax.f32 %v1046_v0, %v3229_v56  ;;  %v989_v25 = vadd.f32 %v973_v26, %v3796_v54  ;;  %v3259_v60 = vsub.f32 %v938_v37, %v988_v4 }
 0x226   : > { %v2185_v9 = vpop.eup %2184  ;;  %v1053_v52 = vmax.f32 %v1051_v34, %v3247_v8  ;;  %v1064_v24 = vlaneseq }
 0x227   : > { %v969_v53 = vmul.f32 0.6931472, %v2185_v9  ;;  %v1029_v30 = vmax.f32 %v1027_v23, %v3216_v12  ;;  %v1050_v44 = vmax.f32 %v1048_v33, %v3232_v13  ;;  %v3273_v26 = vsub.f32 %v940_v10, %v989_v25 }
 0x228   : > { %v3275_v37 = vsub.f32 %v941_v38, %v989_v25  ;;  %v1034_v61 = vmax.f32 %v1032_v1, %v3259_v60 }
 0x229   : > { %v987_v48 = vadd.f32 %v969_v53, %v3797_v49  ;;  %v1031_v20 = vmax.f32 %v1029_v30, %v3252_v58  ;;  %v1052_v57 = vmax.f32 %v1050_v44, %v3255_v51  ;;  %v1065_v44 = vshrl.u32 %v1064_v24, 7 }
 0x22b   : > { %v3266_v0 = vsub.f32 %v3161_v31, %v987_v48  ;;  %v3269_v18 = vsub.f32 %v3176_v3, %v987_v48  ;;  %v1055_v31 = vmax.f32 %v1053_v52, %v3261_v27  ;;  %v1066_v1 = vadd.s32 8, %v1065_v44 }
 0x22c   : > { %v1068_v52 = vadd.s32 24, %v1065_v44  ;;  %v1075_v40 = vadd.s32 80, %v1065_v44 }
 0x22d   : > { %v1033_v4 = vmax.f32 %v1031_v20, %v3266_v0  ;;  %v1054_v9 = vmax.f32 %v1052_v57, %v3269_v18  ;;  %v1067_v20 = vadd.s32 16, %v1065_v44  ;;  %v1069_v57 = vadd.s32 32, %v1065_v44 }
 0x22f   : > { %v1035_v34 = vmax.f32 %v1033_v4, %v3273_v26  ;;  %v1056_v3 = vmax.f32 %v1054_v9, %v3275_v37  ;;  %v1070_v4 = vadd.s32 40, %v1065_v44 }
 0x231   : > { %v1036_v23 = vmax.f32 %v1034_v61, %v1035_v34  ;;  %v1057_v33 = vmax.f32 %v1055_v31, %v1056_v3  ;;  %v1071_v61 = vadd.s32 48, %v1065_v44  ;;  %v1072_v31 = vadd.s32 56, %v1065_v44 }
 0x232   : > { %v1073_v34 = vadd.s32 64, %v1065_v44  ;;  %v1074_v3 = vadd.s32 72, %v1065_v44 }
 0x233   : > { %v1037_v53 = vrot.slane %v1036_v23, 4  ;;  %v1058_v10 = vrot.slane %v1057_v33, 4 }
 0x235   : > { %v1038_v30 = vmax.f32 %v1036_v23, %v1037_v53  ;;  %v1059_v38 = vmax.f32 %v1057_v33, %v1058_v10  ;;  %v1076_v23 = vadd.s32 88, %v1065_v44  ;;  %v1077_v10 = vadd.s32 96, %v1065_v44 }
 0x237   : > { %v1039_v54 = vrot.slane %v1038_v30, 2  ;;  %v1060_v25 = vrot.slane %v1059_v38, 2 }
 0x239   : > { %v1040_v49 = vmax.f32 %v1038_v30, %v1039_v54  ;;  %v1061_v48 = vmax.f32 %v1059_v38, %v1060_v25  ;;  %v1078_v30 = vadd.s32 104, %v1065_v44  ;;  %v3288_v38 = vadd.s32 112, %v1065_v44 }
 0x23a   : > { %v3290_v54 = vadd.s32 120, %v1065_v44 }
 0x23b   : > { %v1041_v50 = vrot.slane %v1040_v49, 1  ;;  %v1062_v9 = vrot.slane %v1061_v48, 1 }
 0x23d   : > { %v3284_v33 = vmax.f32 %v1040_v49, %v1041_v50  ;;  %v3286_v53 = vmax.f32 %v1061_v48, %v1062_v9 }
 0x23f   : > { %vm1081_vm1 = vcmp.eq.f32.partialorder %v3139_v6, %v3284_v33  ;;  %vm1082_vm2 = vcmp.eq.f32.partialorder %v3141_v39, %v3286_v53  ;;  %vm1083_vm3 = vcmp.eq.f32.partialorder %v3182_v59, %v3284_v33  ;;  %vm1084_vm4 = vcmp.eq.f32.partialorder %v3197_v29, %v3286_v53 }
 0x240   : > { %vm1085_vm5 = vcmp.eq.f32.partialorder %v3135_v35, %v3284_v33  ;;  %vm1086_vm6 = vcmp.eq.f32.partialorder %v3137_v2, %v3286_v53  ;;  %vm1087_vm7 = vcmp.eq.f32.partialorder %v3189_v7, %v3284_v33  ;;  %vm1088_vm8 = vcmp.eq.f32.partialorder %v3192_v14, %v3286_v53 }
 0x241   : > { %vm1089_vm9 = vcmp.eq.f32.partialorder %v3145_v17, %v3284_v33  ;;  %vm1106_vm12 = vcmp.eq.f32.partialorder %v3247_v8, %v3286_v53  ;;  %vm1107_vm13 = vcmp.eq.f32.partialorder %v3266_v0, %v3284_v33  ;;  %vm1108_vm14 = vcmp.eq.f32.partialorder %v3269_v18, %v3286_v53 }
 0x242   : > { %vm1109_vm15 = vcmp.eq.f32.partialorder %v3259_v60, %v3284_v33  ;;  %vm1110_vm0 = vcmp.eq.f32.partialorder %v3261_v27, %v3286_v53  ;;  %vm1111_vm10 = vcmp.eq.f32.partialorder %v3273_v26, %v3284_v33  ;;  %vm1112_vm11 = vcmp.eq.f32.partialorder %v3275_v37, %v3286_v53 }
 0x243   : > { %v1113_v50 = vsel %vm1081_vm1, %v1065_v44, 128  ;;  %v1114_v25 = vsel %vm1082_vm2, %v1065_v44, 128  ;;  %v1115_v49 = vsel %vm1083_vm3, %v1066_v1, 128  ;;  %v1116_v48 = vsel %vm1084_vm4, %v1066_v1, 128 }
 0x244   : > { %v1117_v9 = vsel %vm1085_vm5, %v1067_v20, 128  ;;  %v1118_v6 = vsel %vm1086_vm6, %v1067_v20, 128  ;;  %v1119_v39 = vsel %vm1087_vm7, %v1068_v52, 128  ;;  %v1120_v59 = vsel %vm1088_vm8, %v1068_v52, 128 }
 0x245   : > { %v1121_v29 = vsel %vm1089_vm9, %v1069_v57, 128  ;;  %vm3798_vm1 = vcmp.eq.f32.partialorder %v3147_v46, %v3286_v53  ;;  %vm3799_vm2 = vcmp.eq.f32.partialorder %v3200_v63, %v3284_v33  ;;  %vm3800_vm3 = vcmp.eq.f32.partialorder %v3203_v42, %v3286_v53 }
 0x246   : > { %v1122_v35 = vsel %vm3798_vm1, %v1069_v57, 128  ;;  %v1123_v2 = vsel %vm3799_vm2, %v1070_v4, 128  ;;  %v1124_v7 = vsel %vm3800_vm3, %v1070_v4, 128  ;;  %vm3801_vm4 = vcmp.eq.f32.partialorder %v3165_v47, %v3284_v33 }
 0x247   : > { %v1125_v14 = vsel %vm3801_vm4, %v1071_v61, 128  ;;  %vm3802_vm5 = vcmp.eq.f32.partialorder %v3167_v28, %v3286_v53  ;;  %vm3803_vm6 = vcmp.eq.f32.partialorder %v3227_v15, %v3284_v33  ;;  %vm3804_vm7 = vcmp.eq.f32.partialorder %v3229_v56, %v3286_v53 }
 0x248   : > { %v1126_v17 = vsel %vm3802_vm5, %v1071_v61, 128  ;;  %v1127_v46 = vsel %vm3803_vm6, %v1072_v31, 128  ;;  %v1128_v63 = vsel %vm3804_vm7, %v1072_v31, 128  ;;  %vm3805_vm8 = vcmp.eq.f32.partialorder %v3170_v22, %v3284_v33 }
 0x249   : > { %v1129_v42 = vsel %vm3805_vm8, %v1073_v34, 128  ;;  %vm3806_vm9 = vcmp.eq.f32.partialorder %v3179_v32, %v3286_v53  ;;  %vm3807_vm1 = vcmp.eq.f32.partialorder %v3216_v12, %v3284_v33  ;;  %vm3808_vm2 = vcmp.eq.f32.partialorder %v3232_v13, %v3286_v53 }
 0x24a   : > { %v1130_v47 = vsel %vm3806_vm9, %v1073_v34, 128  ;;  %v1131_v28 = vsel %vm3807_vm1, %v1074_v3, 128  ;;  %v1132_v15 = vsel %vm3808_vm2, %v1074_v3, 128  ;;  %vm3809_vm3 = vcmp.eq.f32.partialorder %v3219_v62, %v3284_v33 }
 0x24b   : > { %v1133_v56 = vsel %vm3809_vm3, %v1075_v40, 128  ;;  %vm3810_vm4 = vcmp.eq.f32.partialorder %v3222_v43, %v3286_v53  ;;  %vm3811_vm5 = vcmp.eq.f32.partialorder %v3252_v58, %v3284_v33  ;;  %vm3812_vm6 = vcmp.eq.f32.partialorder %v3255_v51, %v3286_v53 }
 0x24c   : > { %v1134_v22 = vsel %vm3810_vm4, %v1075_v40, 128  ;;  %v1135_v32 = vsel %vm3811_vm5, %v1076_v23, 128  ;;  %v1136_v12 = vsel %vm3812_vm6, %v1076_v23, 128  ;;  %vm3813_vm7 = vcmp.eq.f32.partialorder %v3244_v19, %v3284_v33 }
 0x24d   : > { %v1137_v13 = vsel %vm3813_vm7, %v1077_v10, 128  ;;  %v1138_v62 = vsel %vm1106_vm12, %v1077_v10, 128  ;;  %v1139_v40 = vsel %vm1107_vm13, %v1078_v30, 128  ;;  %v1140_v43 = vsel %vm1108_vm14, %v1078_v30, 128 }
 0x24e   : > { %v1141_v58 = vsel %vm1109_vm15, %v3288_v38, 128  ;;  %v1142_v19 = vsel %vm1110_vm0, %v3288_v38, 128  ;;  %v1143_v8 = vsel %vm1111_vm10, %v3290_v54, 128  ;;  %v1144_v51 = vsel %vm1112_vm11, %v3290_v54, 128 }
 0x24f   : > { %vm1145_vm12 = vcmp.lt.s32.totalorder %v1113_v50, %v1117_v9  ;;  %vm1147_vm13 = vcmp.lt.s32.totalorder %v1115_v49, %v1119_v39  ;;  %vm1184_vm14 = vcmp.lt.s32.totalorder %v1114_v25, %v1118_v6  ;;  %vm1186_vm8 = vcmp.lt.s32.totalorder %v1116_v48, %v1120_v59 }
 0x250   : > { %v1146_v60 = vsel %vm1145_vm12, %v1113_v50, %v1117_v9  ;;  %v1148_v0 = vsel %vm1147_vm13, %v1115_v49, %v1119_v39  ;;  %v1185_v18 = vsel %vm1184_vm14, %v1114_v25, %v1118_v6  ;;  %v1187_v44 = vsel %vm1186_vm8, %v1116_v48, %v1120_v59 }
 0x251   : > { %vm1149_vm15 = vcmp.lt.s32.totalorder %v1146_v60, %v1121_v29  ;;  %vm1151_vm0 = vcmp.lt.s32.totalorder %v1148_v0, %v1123_v2  ;;  %vm1188_vm9 = vcmp.lt.s32.totalorder %v1185_v18, %v1122_v35  ;;  %vm1190_vm1 = vcmp.lt.s32.totalorder %v1187_v44, %v1124_v7 }
 0x252   : > { %v1150_v27 = vsel %vm1149_vm15, %v1146_v60, %v1121_v29  ;;  %v1152_v26 = vsel %vm1151_vm0, %v1148_v0, %v1123_v2  ;;  %v1189_v1 = vsel %vm1188_vm9, %v1185_v18, %v1122_v35  ;;  %v1191_v20 = vsel %vm1190_vm1, %v1187_v44, %v1124_v7 }
 0x253   : > { %vm1153_vm10 = vcmp.lt.s32.totalorder %v1150_v27, %v1125_v14  ;;  %vm1155_vm2 = vcmp.lt.s32.totalorder %v1152_v26, %v1127_v46  ;;  %vm1192_vm3 = vcmp.lt.s32.totalorder %v1189_v1, %v1126_v17  ;;  %vm1194_vm11 = vcmp.lt.s32.totalorder %v1191_v20, %v1128_v63 }
 0x254   : > { %v1154_v37 = vsel %vm1153_vm10, %v1150_v27, %v1125_v14  ;;  %v1156_v52 = vsel %vm1155_vm2, %v1152_v26, %v1127_v46  ;;  %v1193_v57 = vsel %vm1192_vm3, %v1189_v1, %v1126_v17  ;;  %v1195_v4 = vsel %vm1194_vm11, %v1191_v20, %v1128_v63 }
 0x255   : > { %vm1157_vm4 = vcmp.lt.s32.totalorder %v1154_v37, %v1129_v42  ;;  %vm1159_vm5 = vcmp.lt.s32.totalorder %v1156_v52, %v1131_v28  ;;  %vm1196_vm6 = vcmp.lt.s32.totalorder %v1193_v57, %v1130_v47  ;;  %vm1198_vm7 = vcmp.lt.s32.totalorder %v1195_v4, %v1132_v15 }
 0x256   : > { %v1158_v61 = vsel %vm1157_vm4, %v1154_v37, %v1129_v42  ;;  %v1160_v31 = vsel %vm1159_vm5, %v1156_v52, %v1131_v28  ;;  %v1197_v34 = vsel %vm1196_vm6, %v1193_v57, %v1130_v47  ;;  %v1199_v3 = vsel %vm1198_vm7, %v1195_v4, %v1132_v15 }
 0x257   : > { %vm1161_vm12 = vcmp.lt.s32.totalorder %v1158_v61, %v1133_v56  ;;  %vm1163_vm13 = vcmp.lt.s32.totalorder %v1160_v31, %v1135_v32  ;;  %vm1200_vm14 = vcmp.lt.s32.totalorder %v1197_v34, %v1134_v22  ;;  %vm1202_vm8 = vcmp.lt.s32.totalorder %v1199_v3, %v1136_v12 }
 0x258   : > { %v1162_v23 = vsel %vm1161_vm12, %v1158_v61, %v1133_v56  ;;  %v1164_v10 = vsel %vm1163_vm13, %v1160_v31, %v1135_v32  ;;  %v1201_v30 = vsel %vm1200_vm14, %v1197_v34, %v1134_v22  ;;  %v1203_v38 = vsel %vm1202_vm8, %v1199_v3, %v1136_v12 }
 0x259   : > { %vm1165_vm15 = vcmp.lt.s32.totalorder %v1162_v23, %v1137_v13  ;;  %vm1167_vm0 = vcmp.lt.s32.totalorder %v1164_v10, %v1139_v40  ;;  %vm1204_vm9 = vcmp.lt.s32.totalorder %v1201_v30, %v1138_v62  ;;  %vm1206_vm1 = vcmp.lt.s32.totalorder %v1203_v38, %v1140_v43 }
 0x25a   : > { %v1166_v54 = vsel %vm1165_vm15, %v1162_v23, %v1137_v13  ;;  %v1168_v50 = vsel %vm1167_vm0, %v1164_v10, %v1139_v40  ;;  %v1205_v25 = vsel %vm1204_vm9, %v1201_v30, %v1138_v62  ;;  %v1207_v49 = vsel %vm1206_vm1, %v1203_v38, %v1140_v43 }
 0x25b   : > { %vm1169_vm10 = vcmp.lt.s32.totalorder %v1166_v54, %v1141_v58  ;;  %vm1171_vm2 = vcmp.lt.s32.totalorder %v1168_v50, %v1143_v8  ;;  %vm1208_vm3 = vcmp.lt.s32.totalorder %v1205_v25, %v1142_v19  ;;  %vm1210_vm11 = vcmp.lt.s32.totalorder %v1207_v49, %v1144_v51 }
 0x25c   : > { %v1170_v48 = vsel %vm1169_vm10, %v1166_v54, %v1141_v58  ;;  %v1172_v9 = vsel %vm1171_vm2, %v1168_v50, %v1143_v8  ;;  %v1209_v6 = vsel %vm1208_vm3, %v1205_v25, %v1142_v19  ;;  %v1211_v39 = vsel %vm1210_vm11, %v1207_v49, %v1144_v51 }
 0x25d   : > { %vm1173_vm4 = vcmp.lt.s32.totalorder %v1170_v48, %v1172_v9  ;;  %vm1212_vm5 = vcmp.lt.s32.totalorder %v1209_v6, %v1211_v39  ;;  %v1224_v15 = vstv %s1915_s18 }
 0x25e   : > { %v1174_v59 = vsel %vm1173_vm4, %v1170_v48, %v1172_v9  ;;  %v1213_v29 = vsel %vm1212_vm5, %v1209_v6, %v1211_v39 }
 0x25f   : > { %v1175_v35 = vrot.slane %v1174_v59, 4  ;;  %v1214_v2 = vrot.slane %v1213_v29, 4 }
 0x261   : > { %vm1176_vm6 = vcmp.lt.s32.totalorder %v1174_v59, %v1175_v35  ;;  %vm1215_vm7 = vcmp.lt.s32.totalorder %v1213_v29, %v1214_v2 }
 0x262   : > { %v1177_v7 = vsel %vm1176_vm6, %v1174_v59, %v1175_v35  ;;  %v1216_v14 = vsel %vm1215_vm7, %v1213_v29, %v1214_v2 }
 0x263   : > { %v1178_v17 = vrot.slane %v1177_v7, 2  ;;  %v1217_v46 = vrot.slane %v1216_v14, 2 }
 0x265   : > { %vm1179_vm12 = vcmp.lt.s32.totalorder %v1177_v7, %v1178_v17  ;;  %vm1218_vm13 = vcmp.lt.s32.totalorder %v1216_v14, %v1217_v46 }
 0x266   : > { %v1180_v63 = vsel %vm1179_vm12, %v1177_v7, %v1178_v17  ;;  %v1219_v42 = vsel %vm1218_vm13, %v1216_v14, %v1217_v46 }
 0x267   : > { %v1181_v47 = vrot.slane %v1180_v63, 1  ;;  %v1220_v28 = vrot.slane %v1219_v42, 1  ;;  %1272 = sbr.rel (%p1916_p9) target bundleno = 625 (0x271), region = 40 }
 0x269   : > { %vm1182_vm14 = vcmp.lt.s32.totalorder %v1180_v63, %v1181_v47  ;;  %vm1221_vm8 = vcmp.lt.s32.totalorder %v1219_v42, %v1220_v28 }
 0x26a   : > { %v1183_v56 = vsel %vm1182_vm14, %v1180_v63, %v1181_v47  ;;  %v1222_v22 = vsel %vm1221_vm8, %v1219_v42, %v1220_v28 }
 0x26b   : > { %v3457_v32 = vadd.s32 %v1224_v15, %v1183_v56  ;;  %v3459_v12 = vadd.s32 %v1224_v15, %v1222_v22 }
 0x26c   : > { %vm1275_vm15 = vcmp.lt.s32.totalorder %v1064_v24, 256  ;;  %v2504_v13 = vmov -inf   ;;  %v2505_v62 = vmov 0.0   ;;  %v2506_v40 = vmov 0  }
 0x26d   : > { %1277 = vst.msk [vmem:[%s3462_s0] sm:$0x3] %vm1275_vm15, %v2504_v13 }
 0x26e   : > { %1280 = vst.msk [vmem:[#allocation2] sm:$0x3] %vm1275_vm15, %v2504_v13 }
 0x26f   : > { %1278 = vst.msk [vmem:[%s3465_s23] sm:$0x3] %vm1275_vm15, %v2505_v62 }
 0x270   : > { %1279 = vst.msk [vmem:[%s3468_s26] sm:$0x3] %vm1275_vm15, %v2506_v40 }
 0x271 PF: > { %v3814_v58 = vld [vmem:[#allocation49_spill] sm:$0xff]  ;;  %vm1285_vm0 = vcmask 1040384   ;;  %v3815_v8 = vld [vmem:[#allocation48_spill] sm:$0xff]  ;;  %v3824_v49 = vld [vmem:[#allocation38_spill] sm:$0xff]  ;;  %s3553_s27 = sshll.u32 %s2486_s28, 1  ;;  %s1521_s19 = sshll.u32 %s3462_s0, 4  ;;  %s3571_s19 = int_to_ptr.vmem [resolvable:$true] %s1521_s19 }
 0x272   : > { %v1284_v19 = vrot.slane %v3814_v58, 7  ;;  %v3816_v44 = vld [vmem:[#allocation24_spill] sm:$0xff]  ;;  %v3817_v26 = vld [vmem:[#allocation25_spill] sm:$0xff]  ;;  %v3825_v9 = vld [vmem:[#allocation39_spill] sm:$0xff]  ;;  %s1519_s14 = scalar_lea.hbm %s3711_s4, %s3553_s27  ;;  %vm3575_vm1 = vcmp.lt.s32.totalorder %v1064_v24, 256  ;;  %s1491_s12 = scalar_lea.sflag [#allocation5], %s2704_s13 }
 0x273   : > { %v3818_v20 = vld [vmem:[#allocation28_spill] sm:$0xff]  ;;  %v3819_v52 = vld [vmem:[#allocation29_spill] sm:$0xff]  ;;  %v3826_v59 = vld [vmem:[#allocation42_spill] sm:$0xff]  ;;  %s3566_s10 = sshll.u32 %s1519_s14, 4  ;;  %s2332_s11 = scalar_lea.hbm %s3711_s4, 4  ;;  %s1524_s10 = int_to_ptr.hbm [resolvable:$true] %s3566_s10 }
 0x274   : > { %v3476_v43 = vld [vmem:[%s3462_s0] sm:$0x3]  ;;  %v1286_v51 = vsel %vm1285_vm0, %v3815_v8, %v1284_v19  ;;  %v3820_v4 = vld [vmem:[#allocation32_spill] sm:$0xff]  ;;  %v3821_v31 = vld [vmem:[#allocation33_spill] sm:$0xff]  ;;  %s2326_s17 = sshra.s32 %s1524_s10, 4  ;;  %s2327_s17 = int_to_ptr.hbm [resolvable:$true] %s2326_s17 }
 0x275   : > { %v3482_v60 = vmax.f32 %v3476_v43, %v1286_v51  ;;  %v3822_v3 = vld [vmem:[#allocation36_spill] sm:$0xff]  ;;  %v3823_v38 = vld [vmem:[#allocation37_spill] sm:$0xff]  ;;  %v3829_v15 = vld [vmem:[#allocation27_spill] sm:$0xff]  ;;  %s2328_s6 = scalar_lea.hbm %s2327_s17, 2  ;;  %p2333_p3 = scmp.lt.s32.totalorder %s2327_s17, %s3711_s4 }
 0x276   : > { %v3827_v7 = vld [vmem:[#allocation45_spill] sm:$0xff]  ;;  %v3831_v62 = vld [vmem:[#allocation31_spill] sm:$0xff]  ;;  %p2329_p13 = scmp.ne.s32.totalorder %s2327_s17, %s2328_s6  ;;  %p2334_p4 = scmp.lt.s32.totalorder %s2332_s11, %s2328_s6 }
 0x277   : > { %v3485_v0 = vperm.slane %v3482_v60, 0  ;;  %v3488_v18 = vperm.slane %v3482_v60, 1  ;;  %v3833_v8 = vld [vmem:[#allocation35_spill] sm:$0xff]  ;;  %1448 = vst.msk [vmem:[%s3462_s0] sm:$0x3] %vm3575_vm1, %v3482_v60 }
 0x278   : > { %p2330_p0 = pnand %p2329_p13, %p2678_p12  ;;  %p2335_p5 = por %p2334_p4, %p2333_p3 }
 0x279   : > { %v1299_v27 = vsub.f32 %v3816_v44, %v3485_v0  ;;  %v1300_v1 = vsub.f32 %v3817_v26, %v3488_v18  ;;  %v1301_v37 = vsub.f32 %v3818_v20, %v3485_v0  ;;  %v1302_v57 = vsub.f32 %v3819_v52, %v3488_v18  ;;  %v3834_v26 = vld [vmem:[#allocation43_spill] sm:$0xff]  ;;  %v3835_v20 = vld [vmem:[#allocation44_spill] sm:$0xff] }
 0x27a   : > { %v1303_v61 = vsub.f32 %v3820_v4, %v3485_v0  ;;  %v1304_v34 = vsub.f32 %v3821_v31, %v3488_v18  ;;  %v1305_v23 = vsub.f32 %v3822_v3, %v3485_v0  ;;  %v1306_v54 = vsub.f32 %v3823_v38, %v3488_v18  ;;  %v3836_v4 = vld [vmem:[#allocation40_spill] sm:$0xff]  ;;  %v3837_v31 = vld [vmem:[#allocation41_spill] sm:$0xff]  ;;  %p2331_p1 = pneg %p2330_p0 }
 0x27b   : > { %v1331_v10 = vmul.f32 1.442695, %v1299_v27  ;;  %v1333_v30 = vmul.f32 1.442695, %v1300_v1  ;;  %v1335_v50 = vmul.f32 1.442695, %v1301_v37  ;;  %v1307_v48 = vsub.f32 %v3824_v49, %v3485_v0 }
 0x27c   : > { %v1337_v25 = vmul.f32 1.442695, %v1302_v57  ;;  %v1308_v6 = vsub.f32 %v3825_v9, %v3488_v18  ;;  %v1339_v39 = vmul.f32 1.442695, %v1303_v61  ;;  %v1309_v29 = vsub.f32 %v3826_v59, %v3485_v0  ;;  %p2336_p10 = pnand %p2335_p5, %p2331_p1 }
 0x27d   : > { %2186 = vpow2.f32 %v1331_v10  ;;  %v1310_v35 = vsub.f32 %v2811_v41, %v3488_v18  ;;  %v1341_v2 = vmul.f32 1.442695, %v1304_v34  ;;  %v1311_v14 = vsub.f32 %v3827_v7, %v3485_v0  ;;  %v3828_v41 = vld [vmem:[#allocation26_spill] sm:$0xff] }
 0x27e   : > { %2188 = vpow2.f32 %v1333_v30  ;;  %v1312_v17 = vsub.f32 %v2829_v55, %v3488_v18  ;;  %v1343_v46 = vmul.f32 1.442695, %v1305_v23  ;;  %v1313_v63 = vsub.f32 %v2848_v16, %v3485_v0  ;;  %v3830_v55 = vld [vmem:[#allocation30_spill] sm:$0xff] }
 0x27f   : > { %2190 = vpow2.f32 %v1335_v50  ;;  %v1314_v42 = vsub.f32 %v2851_v21, %v3488_v18  ;;  %v1345_v47 = vmul.f32 1.442695, %v1306_v54  ;;  %v1315_v28 = vsub.f32 %v3828_v41, %v3485_v0  ;;  %v3832_v21 = vld [vmem:[#allocation34_spill] sm:$0xff] }
 0x280   : > { %2192 = vpow2.f32 %v1337_v25  ;;  %v1316_v56 = vsub.f32 %v3829_v15, %v3488_v18  ;;  %v1347_v22 = vmul.f32 1.442695, %v1307_v48  ;;  %v1317_v13 = vsub.f32 %v3830_v55, %v3485_v0 }
 0x281   : > { %2194 = vpow2.f32 %v1339_v39  ;;  %v1318_v40 = vsub.f32 %v3831_v62, %v3488_v18  ;;  %v1349_v16 = vmul.f32 1.442695, %v1308_v6  ;;  %v1319_v19 = vsub.f32 %v3832_v21, %v3485_v0 }
 0x282   : > { %2196 = vpow2.f32 %v1341_v2  ;;  %v1320_v51 = vsub.f32 %v3833_v8, %v3488_v18  ;;  %v1351_v44 = vmul.f32 1.442695, %v1309_v29  ;;  %v1321_v1 = vsub.f32 %v3834_v26, %v3485_v0  ;;  %v3562_v26 = vld [vmem:[#allocation2] sm:$0x3] }
 0x283   : > { %v2187_v58 = vpop.eup %2186  ;;  %2198 = vpow2.f32 %v1343_v46  ;;  %v1322_v37 = vsub.f32 %v3835_v20, %v3488_v18  ;;  %v1353_v52 = vmul.f32 1.442695, %v1310_v35  ;;  %v1323_v61 = vsub.f32 %v3836_v4, %v3485_v0  ;;  %v3839_v46 = vld [vmem:[#allocation47_spill] sm:$0xff] }
 0x284   : > { %v2189_v27 = vpop.eup %2188  ;;  %2200 = vpow2.f32 %v1345_v47  ;;  %v1324_v34 = vsub.f32 %v3837_v31, %v3488_v18  ;;  %v1355_v3 = vmul.f32 1.442695, %v1311_v14  ;;  %v1325_v10 = vsub.f32 %v2863_v36, %v3485_v0 }
 0x285   : > { %v2191_v57 = vpop.eup %2190  ;;  %2202 = vpow2.f32 %v1347_v22  ;;  %v1357_v30 = vmul.f32 1.442695, %v1312_v17  ;;  %v1326_v50 = vsub.f32 %v2869_v45, %v3488_v18  ;;  %v1359_v25 = vmul.f32 1.442695, %v1313_v63  ;;  %v3838_v45 = vld [vmem:[#allocation46_spill] sm:$0xff] }
 0x286   : > { %v2193_v23 = vpop.eup %2192  ;;  %2204 = vpow2.f32 %v1349_v16  ;;  %v1395_v38 = vadd.f32 %v2191_v57, %v2187_v58  ;;  %v1327_v9 = vsub.f32 %v2840_v5, %v3485_v0  ;;  %v1361_v6 = vmul.f32 1.442695, %v1314_v42  ;;  %v1457_v57 = vld [vmem:[%s3468_s26] sm:$0x3] }
 0x287   : > { %v2195_v54 = vpop.eup %2194  ;;  %2206 = vpow2.f32 %v1351_v44  ;;  %v1416_v49 = vadd.f32 %v2193_v23, %v2189_v27  ;;  %v1328_v36 = vsub.f32 %v2845_v11, %v3488_v18  ;;  %v1363_v29 = vmul.f32 1.442695, %v1315_v28 }
 0x288   : > { %v2197_v48 = vpop.eup %2196  ;;  %2208 = vpow2.f32 %v1353_v52  ;;  %v1396_v39 = vadd.f32 %v2195_v54, %v1395_v38  ;;  %v1329_v7 = vsub.f32 %v3838_v45, %v3485_v0  ;;  %v1365_v14 = vmul.f32 1.442695, %v1316_v56 }
 0x289   : > { %v2199_v59 = vpop.eup %2198  ;;  %2210 = vpow2.f32 %v1355_v3  ;;  %v1417_v35 = vadd.f32 %v2197_v48, %v1416_v49  ;;  %v1330_v63 = vsub.f32 %v3839_v46, %v3488_v18  ;;  %v1367_v42 = vmul.f32 1.442695, %v1317_v13 }
 0x28a   : > { %v2201_v2 = vpop.eup %2200  ;;  %2212 = vpow2.f32 %v1357_v30  ;;  %v1397_v17 = vadd.f32 %v2199_v59, %v1396_v39  ;;  %v1369_v28 = vmul.f32 1.442695, %v1318_v40  ;;  %v1371_v15 = vmul.f32 1.442695, %v1319_v19 }
 0x28b   : > { %v2203_v5 = vpop.eup %2202  ;;  %2214 = vpow2.f32 %v1359_v25  ;;  %v1418_v47 = vadd.f32 %v2201_v2, %v1417_v35  ;;  %v1373_v56 = vmul.f32 1.442695, %v1320_v51  ;;  %v1375_v62 = vmul.f32 1.442695, %v1321_v1 }
 0x28c   : > { %v2205_v41 = vpop.eup %2204  ;;  %2216 = vpow2.f32 %v1361_v6  ;;  %v1398_v22 = vadd.f32 %v2203_v5, %v1397_v17  ;;  %v1377_v13 = vmul.f32 1.442695, %v1322_v37  ;;  %v1379_v21 = vmul.f32 1.442695, %v1323_v61 }
 0x28d   : > { %v2207_v55 = vpop.eup %2206  ;;  %2218 = vpow2.f32 %v1363_v29  ;;  %v1419_v16 = vadd.f32 %v2205_v41, %v1418_v47  ;;  %v1381_v40 = vmul.f32 1.442695, %v1324_v34  ;;  %v1383_v19 = vmul.f32 1.442695, %v1325_v10 }
 0x28e   : > { %v2209_v58 = vpop.eup %2208  ;;  %2220 = vpow2.f32 %v1365_v14  ;;  %v1399_v8 = vadd.f32 %v2207_v55, %v1398_v22  ;;  %v1385_v1 = vmul.f32 1.442695, %v1326_v50  ;;  %v1452_v52 = vperm.slane %v3562_v26, 1 }
 0x28f   : > { %v2211_v44 = vpop.eup %2210  ;;  %2222 = vpow2.f32 %v1367_v42  ;;  %v1420_v27 = vadd.f32 %v2209_v58, %v1419_v16  ;;  %v1387_v4 = vmul.f32 1.442695, %v1327_v9  ;;  %v1459_v31 = vperm.slane %v1457_v57, 1 }
 0x290   : > { %v2213_v51 = vpop.eup %2212  ;;  %2224 = vpow2.f32 %v1369_v28  ;;  %v1400_v20 = vadd.f32 %v2211_v44, %v1399_v8  ;;  %v1451_v23 = vperm.slane %v3562_v26, 0  ;;  %vm1456_vm9 = vcmp.gt.f32.partialorder %v3286_v53, %v1452_v52 }
 0x291   : > { %v2215_v37 = vpop.eup %2214  ;;  %2226 = vpow2.f32 %v1371_v15  ;;  %v1421_v61 = vadd.f32 %v2213_v51, %v1420_v27  ;;  %v1458_v38 = vperm.slane %v1457_v57, 0  ;;  %v1461_v54 = vsel %vm1456_vm9, %v3459_v12, %v1459_v31 }
 0x292   : > { %v2217_v34 = vpop.eup %2216  ;;  %2228 = vpow2.f32 %v1373_v56  ;;  %v1401_v3 = vadd.f32 %v2215_v37, %v1400_v20  ;;  %vm1455_vm10 = vcmp.gt.f32.partialorder %v3284_v33, %v1451_v23  ;;  %v1462_v6 = vrot.slane %v1461_v54, 7 }
 0x293   : > { %v2219_v10 = vpop.eup %2218  ;;  %2230 = vpow2.f32 %v1375_v62  ;;  %v1422_v30 = vadd.f32 %v2217_v34, %v1421_v61  ;;  %v1460_v12 = vsel %vm1455_vm10, %v3457_v32, %v1458_v38  ;;  %v1389_v24 = vmul.f32 1.442695, %v1328_v36 }
 0x294   : > { %v2221_v50 = vpop.eup %2220  ;;  %2232 = vpow2.f32 %v1377_v13  ;;  %v1402_v25 = vadd.f32 %v2219_v10, %v1401_v3  ;;  %v1467_v29 = vrot.slane %v3286_v53, 7 }
 0x295   : > { %v2223_v48 = vpop.eup %2222  ;;  %2234 = vpow2.f32 %v1379_v21  ;;  %v1423_v9 = vadd.f32 %v2221_v50, %v1422_v30 }
 0x296   : > { %v2225_v39 = vpop.eup %2224  ;;  %2236 = vpow2.f32 %v1381_v40  ;;  %v1403_v59 = vadd.f32 %v2223_v48, %v1402_v25 }
 0x297   : > { %2339 = shalt.err (!%p2336_p10)
}
 0x298   : > { %1970 = dma.vmem_to_hbm [thread:$0]  (%p2678_p12), %s3571_s19, 32, %s1524_s10, %s1491_s12   ;;  %v2227_v11 = vpop.eup %2226  ;;  %2238 = vpow2.f32 %v1383_v19  ;;  %v1391_v53 = vmul.f32 1.442695, %v1329_v7  ;;  %v1424_v32 = vadd.f32 %v2225_v39, %v1423_v9  ;;  %v1463_v36 = vsel %vm1285_vm0, %v1460_v12, %v1462_v6  ;;  %v1289_v37 = vld [vmem:[%s3465_s23] sm:$0x3] }
 0x299   : > { %v2229_v35 = vpop.eup %2228  ;;  %2240 = vpow2.f32 %v1385_v1  ;;  %v1393_v2 = vmul.f32 1.442695, %v1330_v63  ;;  %v1404_v14 = vadd.f32 %v2227_v11, %v1403_v59  ;;  %1464 = vst.msk [vmem:[%s3468_s26] sm:$0x3] %vm3575_vm1, %v1463_v36  ;;  %v1468_v17 = vsel %vm1285_vm0, %v3284_v33, %v1467_v29  ;;  %s1533_s0 = scalar_lea.hbm %s3712_s5, %s3553_s27  ;;  %s3842_s14 = sld [smem:[#allocation53_spill]] }
 0x29a   : > { %v2231_v5 = vpop.eup %2230  ;;  %2242 = vpow2.f32 %v1387_v4  ;;  %v1425_v0 = vadd.f32 %v2229_v35, %v1424_v32  ;;  %v1470_v45 = vmax.f32 %v3562_v26, %v1468_v17  ;;  %v1290_v55 = vsub.f32 %v3476_v43, %v3482_v60  ;;  %s1495_s10 = sand.u32 1, %s2596_s8   ;;  %s1535_s12 = sshll.u32 %s3465_s23, 4  ;;  %s1536_s12 = int_to_ptr.vmem [resolvable:$true] %s1535_s12 }
 0x29b   : > { %v2233_v7 = vpop.eup %2232  ;;  %2244 = vpow2.f32 %v1389_v24  ;;  %v1405_v42 = vadd.f32 %v2231_v5, %v1404_v14  ;;  %s1537_s17 = sshll.u32 %s1533_s0, 4  ;;  %s1549_s6 = sshll.u32 %s3468_s26, 4  ;;  %s1538_s17 = int_to_ptr.hbm [resolvable:$true] %s1537_s17  ;;  %s3637_s6 = int_to_ptr.vmem [resolvable:$true] %s1549_s6 }
 0x29c   : > { %v2235_v47 = vpop.eup %2234  ;;  %2246 = vpow2.f32 %v1391_v53  ;;  %v1426_v41 = vadd.f32 %v2233_v7, %v1425_v0  ;;  %1471 = vst.msk [vmem:[#allocation2] sm:$0x3] %vm3575_vm1, %v1470_v45  ;;  %v1291_v44 = vmul.f32 1.442695, %v1290_v55  ;;  %s1496_s8 = scalar_lea.sflag [#allocation10], %s1495_s10  ;;  %s2360_s20 = scalar_lea.hbm %s3712_s5, 4 }
 0x29d   : > { %v2237_v18 = vpop.eup %2236  ;;  %2248 = vpow2.f32 %v1393_v2  ;;  %v1406_v46 = vadd.f32 %v2235_v47, %v1405_v42 }
 0x29e   : > { %v2239_v63 = vpop.eup %2238  ;;  %v1427_v28 = vadd.f32 %v2237_v18, %v1426_v41  ;;  %2250 = vpow2.f32 %v1291_v44 }
 0x29f   : > { %v2241_v33 = vpop.eup %2240  ;;  %v1407_v15 = vadd.f32 %v2239_v63, %v1406_v46  ;;  %s1547_s19 = scalar_lea.hbm %s3842_s14, %s3553_s27  ;;  %s2354_s27 = sshra.s32 %s1538_s17, 4  ;;  %s2355_s27 = int_to_ptr.hbm [resolvable:$true] %s2354_s27 }
 0x2a0   : > { %v2243_v22 = vpop.eup %2242  ;;  %v1428_v56 = vadd.f32 %v2241_v33, %v1427_v28  ;;  %s3634_s29 = sshll.u32 %s1547_s19, 4  ;;  %s2356_s24 = scalar_lea.hbm %s2355_s27, 2  ;;  %s1552_s29 = int_to_ptr.hbm [resolvable:$true] %s3634_s29 }
 0x2a1   : > { %v2245_v62 = vpop.eup %2244  ;;  %v1408_v16 = vadd.f32 %v2243_v22, %v1407_v15  ;;  %p2357_p11 = scmp.ne.s32.totalorder %s2355_s27, %s2356_s24  ;;  %p2361_p8 = scmp.lt.s32.totalorder %s2355_s27, %s3712_s5 }
 0x2a2   : > { %v2247_v58 = vpop.eup %2246  ;;  %v1429_v13 = vadd.f32 %v2245_v62, %v1428_v56  ;;  %p2362_p9 = scmp.lt.s32.totalorder %s2360_s20, %s2356_s24 }
 0x2a3   : > { %v2249_v21 = vpop.eup %2248  ;;  %v1409_v8 = vadd.f32 %v2247_v58, %v1408_v16  ;;  %p2358_p6 = pnand %p2357_p11, %p2678_p12 }
 0x2a4   : > { %v1430_v40 = vadd.f32 %v2249_v21, %v1429_v13  ;;  %v2251_v57 = vpop.eup %2250  ;;  %p2363_p13 = por %p2362_p9, %p2361_p8 }
 0x2a5   : > { %v1410_v19 = vrot.slane %v1409_v8, 4  ;;  %v1293_v34 = vmul.f32 %v2251_v57, %v1289_v37  ;;  %p2359_p7 = pneg %p2358_p6 }
 0x2a6   : > { %v1431_v27 = vrot.slane %v1430_v40, 4 }
 0x2a7   : > { %v1411_v26 = vadd.f32 %v1410_v19, %v1409_v8  ;;  %p2364_p0 = pnand %p2363_p13, %p2359_p7 }
 0x2a8   : > { %v1432_v51 = vadd.f32 %v1431_v27, %v1430_v40 }
 0x2a9   : > { %v1412_v43 = vrot.slane %v1411_v26, 2 }
 0x2aa   : > { %v1433_v60 = vrot.slane %v1432_v51, 2 }
 0x2ab   : > { %v1413_v1 = vadd.f32 %v1412_v43, %v1411_v26 }
 0x2ac   : > { %v1434_v20 = vadd.f32 %v1433_v60, %v1432_v51 }
 0x2ad   : > { %v1414_v52 = vrot.slane %v1413_v1, 1 }
 0x2ae   : > { %v1435_v4 = vrot.slane %v1434_v20, 1 }
 0x2af   : > { %v1415_v61 = vadd.f32 %v1414_v52, %v1413_v1 }
 0x2b0   : > { %v1436_v31 = vadd.f32 %v1435_v4, %v1434_v20 }
 0x2b2   : > { %v1439_v3 = vrot.slane %v1436_v31, 7 }
 0x2b4   : > { %v1440_v23 = vsel %vm1285_vm0, %v1415_v61, %v1439_v3 }
 0x2b5   : > { %v1442_v10 = vadd.f32 %v1440_v23, %v1293_v34 }
 0x2b7   : > { %1447 = vst.msk [vmem:[%s3465_s23] sm:$0x3] %vm3575_vm1, %v1442_v10 }
 0x2b8   : > { %2367 = shalt.err (!%p2364_p0)
}
 0x2b9   : > { %1971 = dma.vmem_to_hbm [thread:$0]  (%p2678_p12), %s1536_s12, 32, %s1538_s17, %s1496_s8  }
 0x2ba   : > { %s2382_s23 = sshra.s32 %s1552_s29, 4  ;;  %s2388_s30 = scalar_lea.hbm %s3842_s14, 4  ;;  %s2383_s23 = int_to_ptr.hbm [resolvable:$true] %s2382_s23 }
 0x2bb   : > { %s2384_s18 = scalar_lea.hbm %s2383_s23, 2  ;;  %p2389_p5 = scmp.lt.s32.totalorder %s2383_s23, %s3842_s14 }
 0x2bc   : > { %p2385_p1 = scmp.ne.s32.totalorder %s2383_s23, %s2384_s18  ;;  %p2390_p10 = scmp.lt.s32.totalorder %s2388_s30, %s2384_s18 }
 0x2be   : > { %p2386_p3 = pnand %p2385_p1, %p2678_p12  ;;  %p2391_p11 = por %p2390_p10, %p2389_p5 }
 0x2c0   : > { %p2387_p4 = pneg %p2386_p3 }
 0x2c2   : > { %p2392_p6 = pnand %p2391_p11, %p2387_p4 }
 0x2c4   : > { %2395 = shalt.err (!%p2392_p6)
}
 0x2c5   : > { %1972 = dma.vmem_to_hbm [thread:$0]  (%p2678_p12), %s3637_s6, 32, %s1552_s29, %s1496_s8  }
 0x2c6 PF: > { %p1994_p7 = scmp.ge.s32.totalorder %s2498_s7, 2  ;;  %s1587_s12 = sand.u32 1, %s2458_s21  }
 0x2c7   : > { %s1588_s17 = scalar_lea.sflag [#allocation5], %s1587_s12 }
 0x2c8   : > { %p1984_p8 = pnand %p1994_p7, %p2682_p2 }
 0x2ca   : > { %p1985_p9 = pneg %p1984_p8 }
 0x2cc   : > { %2449 = dma.done.wait (%p1985_p9), %s1588_s17, 32  }
 0x2cd   : > { %2451 = vsyncadd (%p1985_p9), %s1588_s17, 4294967264  ;;  %s3843_s27 = sadd.s32 4294967294, %s2498_s7  }
 0x2ce   : > { %s1597_s24 = sand.u32 1, %s3843_s27  }
 0x2cf   : > { %s1598_s15 = scalar_lea.sflag [#allocation10], %s1597_s24 }
 0x2d0   : > { %2453 = dma.done.wait (%p1985_p9), %s1598_s15, 64  }
 0x2d1   : > { %2455 = vsyncadd (%p1985_p9), %s1598_s15, 4294967232  ;;  %s29_s7 = sadd.s32 1, %s2498_s7   ;;  %s3844_s6 = sld [smem:[#allocation16_spill]] }
 0x2d2   : > { %p26_p12 = scmp.ge.s32.totalorder %s29_s7, 6   ;;  %s3845_s23 = sld [smem:[#allocation23_spill]] }
 0x2d3   : > { %s3846_s29 = sld [smem:[#allocation17_spill]]  ;;  %s3852_s21 = smov %s2462_s22 }
 0x2d4   : > { %s3847_s26 = sld [smem:[#allocation22_spill]]  ;;  %s3854_s24 = smov %s2474_s25 }
 0x2d5   : > { %s3848_s27 = sld [smem:[#allocation18_spill]] }
 0x2d6   : > { %s3849_s28 = sld [smem:[#allocation19_spill]] }
 0x2d7   : > { %s3850_s16 = sld [smem:[#allocation20_spill]]  ;;  %s3853_s22 = smov %s3844_s6 }
 0x2d8   : > { %s3851_s30 = sld [smem:[#allocation21_spill]] }
 0x2d9   : > { %s3855_s25 = smov %s3846_s29  ;;  %28 = sbr.rel (!%p26_p12) target bundleno = 16 (0x10), region = 146 }
 0x2dd   : > { %s3856_s29 = smov %s3850_s16 }
 0x2de   :  { %1614 = vsyncpa [#allocation4], 1 }
 0x2df   :  { %1616 = vsyncpa [#allocation4 + $0x1], 1 }
 0x2e0   :  { %1617 = vsyncpa [#allocation7], 1 }
 0x2e1   :  { %1619 = vsyncpa [#allocation7 + $0x1], 1 }
 0x2e2   :  { %1620 = vsyncpa [#allocation5], 1 }
 0x2e3   :  { %1622 = vsyncpa [#allocation5 + $0x1], 1 }
 0x2e4   :  { %1623 = vsyncpa [#allocation10], 1 }
 0x2e5   :  { %1625 = vsyncpa [#allocation10 + $0x1], 1 }

</bundles_post_ra>
